<compile_context>
chip_gen: v7x
topology: tpu7x:2x2x1
jax: 0.10.0
libtpu: 0.0.40
codegen_flags: <defaults>
</compile_context>

<pallas_src>
import math
import numpy as np
import jax
import jax.numpy as jnp
from jax.experimental import pallas as pl
from jax.experimental.pallas import tpu as pltpu


def lstm_fc_kernel(x_ref, w_ih_ref, w_hh_ref, b_ref, w_fc_ref, b_fc_ref, out_ref):
    # Per-grid-program shapes: x_ref (S, I), w_hh_ref (H, 4H), out_ref (S, 1).
    S = x_ref.shape[0]
    H = w_hh_ref.shape[0]

    # Input projection for ALL timesteps of this sequence in one MXU matmul:
    # (S, I) @ (I, 4H) + b.  Kept as a value; no VMEM scratch round trip.
    gx = jnp.dot(x_ref[...], w_ih_ref[...],
                 preferred_element_type=jnp.float32) + b_ref[...]          # (S, 4H)

    # Hoist the recurrent weight load out of the unrolled loop.
    w_hh = w_hh_ref[...]                                                   # (H, 4H)

    h = jnp.zeros((1, H), jnp.float32)
    c = jnp.zeros((1, H), jnp.float32)
    hs = []
    # S is static and tiny: fully unroll so consecutive steps' MXU pushes and the
    # EUP sigmoid/tanh chains interleave, and all gx slices stay static.
    for t in range(S):
        gates = gx[t:t + 1, :] + jnp.dot(h, w_hh,
                                         preferred_element_type=jnp.float32)  # (1, 4H)
        i_g = jax.nn.sigmoid(gates[:, 0 * H:1 * H])
        f_g = jax.nn.sigmoid(gates[:, 1 * H:2 * H])
        g_g = jnp.tanh(gates[:, 2 * H:3 * H])
        o_g = jax.nn.sigmoid(gates[:, 3 * H:4 * H])
        c = f_g * c + i_g * g_g
        h = o_g * jnp.tanh(c)
        hs.append(h)

    h_all = jnp.concatenate(hs, axis=0)                                    # (S, H)
    # Fused FC head: VPU multiply + XLU lane-reduce instead of an N=1 MXU matmul.
    y = jnp.sum(h_all * w_fc_ref[...], axis=-1, keepdims=True) + b_fc_ref[...]  # (S, 1)
    out_ref[...] = y


def lstm_forward(x, params):
    B, S, I = x.shape
    H = params["w_hh_t"].shape[0]

    # Wrapper-side layout plumbing (free): row-form FC weight.
    w_fc_row = params["w_fc_t"].T              # (1, H)

    out = pl.pallas_call(
        lstm_fc_kernel,
        out_shape=jax.ShapeDtypeStruct((B, S, 1), jnp.float32),
        grid=(B,),
        in_specs=[
            pl.BlockSpec((None, S, I), lambda b: (b, 0, 0)),      # this sequence (S, I)
            pl.BlockSpec((I, 4 * H), lambda b: (0, 0)),           # w_ih_t (DMA'd once)
            pl.BlockSpec((H, 4 * H), lambda b: (0, 0)),           # w_hh_t (DMA'd once)
            pl.BlockSpec((1, 4 * H), lambda b: (0, 0)),           # folded bias
            pl.BlockSpec((1, H), lambda b: (0, 0)),               # fc weight row
            pl.BlockSpec((1, 1), lambda b: (0, 0)),               # fc bias
        ],
        out_specs=pl.BlockSpec((None, S, 1), lambda b: (b, 0, 0)),  # kernel sees (S, 1)
        compiler_params=pltpu.CompilerParams(
            dimension_semantics=("parallel",)),                   # both TCs on v7x
    )(x, params["w_ih_t"], params["w_hh_t"], params["b"], w_fc_row, params["b_fc"])

    return out.reshape(B, S)


def init_params(key, input_size, hidden_size, output_size):
    """Deterministic init matching PyTorch shapes (uniform(-1/sqrt(H), 1/sqrt(H)))."""
    ks = jax.random.split(key, 6)
    k = 1.0 / math.sqrt(hidden_size)
    H, I, O = hidden_size, input_size, output_size
    w_ih = jax.random.uniform(ks[0], (4 * H, I), jnp.float32, -k, k)   # torch weight_ih_l0
    w_hh = jax.random.uniform(ks[1], (4 * H, H), jnp.float32, -k, k)   # torch weight_hh_l0
    b_ih = jax.random.uniform(ks[2], (4 * H,), jnp.float32, -k, k)
    b_hh = jax.random.uniform(ks[3], (4 * H,), jnp.float32, -k, k)
    w_fc = jax.random.uniform(ks[4], (O, H), jnp.float32, -k, k)       # torch fc.weight
    b_fc = jax.random.uniform(ks[5], (O,), jnp.float32, -k, k)
    return {
        "w_ih_t": w_ih.T,                        # (I, 4H)
        "w_hh_t": w_hh.T,                        # (H, 4H)
        "b": (b_ih + b_hh).reshape(1, 4 * H),    # (1, 4H)
        "w_fc_t": w_fc.T,                        # (H, 1)
        "b_fc": b_fc.reshape(1, O),              # (1, 1)
    }


def lstm_ref(x, p):
    """Pure-JAX reference of the same forward pass (for correctness check)."""
    B, S, I = x.shape
    H = p["w_hh_t"].shape[0]
    gx = jnp.einsum("bsi,ig->bsg", x, p["w_ih_t"]) + p["b"][0]

    def step(carry, g_t):
        h, c = carry
        gates = g_t + h @ p["w_hh_t"]
        i_g = jax.nn.sigmoid(gates[:, 0 * H:1 * H])
        f_g = jax.nn.sigmoid(gates[:, 1 * H:2 * H])
        g_g = jnp.tanh(gates[:, 2 * H:3 * H])
        o_g = jax.nn.sigmoid(gates[:, 3 * H:4 * H])
        c_new = f_g * c + i_g * g_g
        h_new = o_g * jnp.tanh(c_new)
        return (h_new, c_new), h_new

    h0 = jnp.zeros((B, H), jnp.float32)
    c0 = jnp.zeros((B, H), jnp.float32)
    _, hs = jax.lax.scan(step, (h0, c0), jnp.swapaxes(gx, 0, 1))  # (S, B, H)
    hs = jnp.swapaxes(hs, 0, 1)                                   # (B, S, H)
    y = jnp.einsum("bsh,ho->bso", hs, p["w_fc_t"]) + p["b_fc"][0]
    return y[..., 0]                                              # (B, S)


if __name__ == "__main__":
    # Module constants: input_size=256, hidden_size=128, output_size=1, num_layers=1
    B, S, I, H, O = 2, 8, 256, 128, 1

    key = jax.random.PRNGKey(0)
    kx, kp = jax.random.split(key)
    x = jax.random.normal(kx, (B, S, I), jnp.float32)
    params = init_params(kp, I, H, O)

    out = jax.block_until_ready(lstm_forward(x, params))
    ref = jax.block_until_ready(lstm_ref(x, params))

    assert out.shape == (B, S), out.shape
    np.testing.assert_allclose(np.asarray(out), np.asarray(ref), rtol=2e-4, atol=2e-4)
    print("KERNEL_OK")
</pallas_src>

<mosaic_0001>
module attributes {stable_mosaic.version = 11 : i64} {
  func.func @lstm_fc_kernel(%arg0: i32, %arg1: memref<1x8x256xf32, #tpu.memory_space<vmem>>, %arg2: memref<256x512xf32, #tpu.memory_space<vmem>>, %arg3: memref<128x512xf32, #tpu.memory_space<vmem>>, %arg4: memref<1x512xf32, #tpu.memory_space<vmem>>, %arg5: memref<1x128xf32, #tpu.memory_space<vmem>>, %arg6: memref<1x1xf32, #tpu.memory_space<vmem>>, %arg7: memref<1x8x1xf32, #tpu.memory_space<vmem>>) attributes {dimension_semantics = [#tpu.dimension_semantics<parallel>], iteration_bounds = array<i64: 2>, scalar_prefetch = 0 : i64, scratch_operands = 0 : i64, tpu.core_type = #tpu.core_type<tc>, window_params = [{transform_indices = @transform_0, window_bounds = array<i64: 1, 8, 256>}, {pipeline_mode = #tpu.pipeline_mode<synchronous>, transform_indices = @transform_1, window_bounds = array<i64: 256, 512>}, {pipeline_mode = #tpu.pipeline_mode<synchronous>, transform_indices = @transform_2, window_bounds = array<i64: 128, 512>}, {pipeline_mode = #tpu.pipeline_mode<synchronous>, transform_indices = @transform_3, window_bounds = array<i64: 1, 512>}, {pipeline_mode = #tpu.pipeline_mode<synchronous>, transform_indices = @transform_4, window_bounds = array<i64: 1, 128>}, {pipeline_mode = #tpu.pipeline_mode<synchronous>, transform_indices = @transform_5, window_bounds = array<i64: 1, 1>}, {transform_indices = @transform_6, window_bounds = array<i64: 1, 8, 1>}]} {
    %c0 = arith.constant 0 : index
    %c0_0 = arith.constant 0 : index
    %c0_1 = arith.constant 0 : index
    %0 = vector.load %arg1[%c0, %c0_0, %c0_1] : memref<1x8x256xf32, #tpu.memory_space<vmem>>, vector<1x8x256xf32>
    %1 = vector.shape_cast %0 : vector<1x8x256xf32> to vector<8x256xf32>
    %c0_2 = arith.constant 0 : index
    %c0_3 = arith.constant 0 : index
    %2 = vector.load %arg2[%c0_2, %c0_3] : memref<256x512xf32, #tpu.memory_space<vmem>>, vector<256x512xf32>
    %cst = arith.constant dense<0.000000e+00> : vector<8x512xf32>
    %3 = tpu.matmul %1, %2, %cst {dimension_numbers = #tpu.dot_dimension_numbers<[1], [0], [0], [1], [0, 0, 1, 1], [], []>} : vector<8x256xf32>, vector<256x512xf32>, vector<8x512xf32> -> vector<8x512xf32>
    %c0_4 = arith.constant 0 : index
    %c0_5 = arith.constant 0 : index
    %4 = vector.load %arg4[%c0_4, %c0_5] : memref<1x512xf32, #tpu.memory_space<vmem>>, vector<1x512xf32>
    %5 = vector.broadcast %4 : vector<1x512xf32> to vector<8x512xf32>
    %6 = arith.addf %3, %5 : vector<8x512xf32>
    %c0_6 = arith.constant 0 : index
    %c0_7 = arith.constant 0 : index
    %7 = vector.load %arg3[%c0_6, %c0_7] : memref<128x512xf32, #tpu.memory_space<vmem>>, vector<128x512xf32>
    %cst_8 = arith.constant 0.000000e+00 : f32
    %8 = vector.broadcast %cst_8 : f32 to vector<1x128xf32>
    %cst_9 = arith.constant 0.000000e+00 : f32
    %9 = vector.broadcast %cst_9 : f32 to vector<1x128xf32>
    %10 = vector.extract_strided_slice %6 {offsets = [0, 0], sizes = [1, 512], strides = [1, 1]} : vector<8x512xf32> to vector<1x512xf32>
    %cst_10 = arith.constant dense<0.000000e+00> : vector<1x512xf32>
    %11 = tpu.matmul %8, %7, %cst_10 {dimension_numbers = #tpu.dot_dimension_numbers<[1], [0], [0], [1], [0, 0, 1, 1], [], []>} : vector<1x128xf32>, vector<128x512xf32>, vector<1x512xf32> -> vector<1x512xf32>
    %12 = arith.addf %10, %11 : vector<1x512xf32>
    %13 = vector.extract_strided_slice %12 {offsets = [0, 0], sizes = [1, 128], strides = [1, 1]} : vector<1x512xf32> to vector<1x128xf32>
    %14 = arith.negf %13 : vector<1x128xf32>
    %15 = math.exp %14 : vector<1x128xf32>
    %cst_11 = arith.constant 1.000000e+00 : f32
    %16 = vector.broadcast %cst_11 : f32 to vector<1x128xf32>
    %17 = arith.addf %16, %15 : vector<1x128xf32>
    %18 = arith.divf %16, %17 : vector<1x128xf32>
    %19 = vector.extract_strided_slice %12 {offsets = [0, 128], sizes = [1, 128], strides = [1, 1]} : vector<1x512xf32> to vector<1x128xf32>
    %20 = arith.negf %19 : vector<1x128xf32>
    %21 = math.exp %20 : vector<1x128xf32>
    %cst_12 = arith.constant 1.000000e+00 : f32
    %22 = vector.broadcast %cst_12 : f32 to vector<1x128xf32>
    %23 = arith.addf %22, %21 : vector<1x128xf32>
    %24 = arith.divf %22, %23 : vector<1x128xf32>
    %25 = vector.extract_strided_slice %12 {offsets = [0, 256], sizes = [1, 128], strides = [1, 1]} : vector<1x512xf32> to vector<1x128xf32>
    %26 = math.tanh %25 : vector<1x128xf32>
    %27 = vector.extract_strided_slice %12 {offsets = [0, 384], sizes = [1, 128], strides = [1, 1]} : vector<1x512xf32> to vector<1x128xf32>
    %28 = arith.negf %27 : vector<1x128xf32>
    %29 = math.exp %28 : vector<1x128xf32>
    %cst_13 = arith.constant 1.000000e+00 : f32
    %30 = vector.broadcast %cst_13 : f32 to vector<1x128xf32>
    %31 = arith.addf %30, %29 : vector<1x128xf32>
    %32 = arith.divf %30, %31 : vector<1x128xf32>
    %33 = arith.mulf %24, %9 : vector<1x128xf32>
    %34 = arith.mulf %18, %26 : vector<1x128xf32>
    %35 = arith.addf %33, %34 : vector<1x128xf32>
    %36 = math.tanh %35 : vector<1x128xf32>
    %37 = arith.mulf %32, %36 : vector<1x128xf32>
    %38 = vector.extract_strided_slice %6 {offsets = [1, 0], sizes = [1, 512], strides = [1, 1]} : vector<8x512xf32> to vector<1x512xf32>
    %cst_14 = arith.constant dense<0.000000e+00> : vector<1x512xf32>
    %39 = tpu.matmul %37, %7, %cst_14 {dimension_numbers = #tpu.dot_dimension_numbers<[1], [0], [0], [1], [0, 0, 1, 1], [], []>} : vector<1x128xf32>, vector<128x512xf32>, vector<1x512xf32> -> vector<1x512xf32>
    %40 = arith.addf %38, %39 : vector<1x512xf32>
    %41 = vector.extract_strided_slice %40 {offsets = [0, 0], sizes = [1, 128], strides = [1, 1]} : vector<1x512xf32> to vector<1x128xf32>
    %42 = arith.negf %41 : vector<1x128xf32>
    %43 = math.exp %42 : vector<1x128xf32>
    %cst_15 = arith.constant 1.000000e+00 : f32
    %44 = vector.broadcast %cst_15 : f32 to vector<1x128xf32>
    %45 = arith.addf %44, %43 : vector<1x128xf32>
    %46 = arith.divf %44, %45 : vector<1x128xf32>
    %47 = vector.extract_strided_slice %40 {offsets = [0, 128], sizes = [1, 128], strides = [1, 1]} : vector<1x512xf32> to vector<1x128xf32>
    %48 = arith.negf %47 : vector<1x128xf32>
    %49 = math.exp %48 : vector<1x128xf32>
    %cst_16 = arith.constant 1.000000e+00 : f32
    %50 = vector.broadcast %cst_16 : f32 to vector<1x128xf32>
    %51 = arith.addf %50, %49 : vector<1x128xf32>
    %52 = arith.divf %50, %51 : vector<1x128xf32>
    %53 = vector.extract_strided_slice %40 {offsets = [0, 256], sizes = [1, 128], strides = [1, 1]} : vector<1x512xf32> to vector<1x128xf32>
    %54 = math.tanh %53 : vector<1x128xf32>
    %55 = vector.extract_strided_slice %40 {offsets = [0, 384], sizes = [1, 128], strides = [1, 1]} : vector<1x512xf32> to vector<1x128xf32>
    %56 = arith.negf %55 : vector<1x128xf32>
    %57 = math.exp %56 : vector<1x128xf32>
    %cst_17 = arith.constant 1.000000e+00 : f32
    %58 = vector.broadcast %cst_17 : f32 to vector<1x128xf32>
    %59 = arith.addf %58, %57 : vector<1x128xf32>
    %60 = arith.divf %58, %59 : vector<1x128xf32>
    %61 = arith.mulf %52, %35 : vector<1x128xf32>
    %62 = arith.mulf %46, %54 : vector<1x128xf32>
    %63 = arith.addf %61, %62 : vector<1x128xf32>
    %64 = math.tanh %63 : vector<1x128xf32>
    %65 = arith.mulf %60, %64 : vector<1x128xf32>
    %66 = vector.extract_strided_slice %6 {offsets = [2, 0], sizes = [1, 512], strides = [1, 1]} : vector<8x512xf32> to vector<1x512xf32>
    %cst_18 = arith.constant dense<0.000000e+00> : vector<1x512xf32>
    %67 = tpu.matmul %65, %7, %cst_18 {dimension_numbers = #tpu.dot_dimension_numbers<[1], [0], [0], [1], [0, 0, 1, 1], [], []>} : vector<1x128xf32>, vector<128x512xf32>, vector<1x512xf32> -> vector<1x512xf32>
    %68 = arith.addf %66, %67 : vector<1x512xf32>
    %69 = vector.extract_strided_slice %68 {offsets = [0, 0], sizes = [1, 128], strides = [1, 1]} : vector<1x512xf32> to vector<1x128xf32>
    %70 = arith.negf %69 : vector<1x128xf32>
    %71 = math.exp %70 : vector<1x128xf32>
    %cst_19 = arith.constant 1.000000e+00 : f32
    %72 = vector.broadcast %cst_19 : f32 to vector<1x128xf32>
    %73 = arith.addf %72, %71 : vector<1x128xf32>
    %74 = arith.divf %72, %73 : vector<1x128xf32>
    %75 = vector.extract_strided_slice %68 {offsets = [0, 128], sizes = [1, 128], strides = [1, 1]} : vector<1x512xf32> to vector<1x128xf32>
    %76 = arith.negf %75 : vector<1x128xf32>
    %77 = math.exp %76 : vector<1x128xf32>
    %cst_20 = arith.constant 1.000000e+00 : f32
    %78 = vector.broadcast %cst_20 : f32 to vector<1x128xf32>
    %79 = arith.addf %78, %77 : vector<1x128xf32>
    %80 = arith.divf %78, %79 : vector<1x128xf32>
    %81 = vector.extract_strided_slice %68 {offsets = [0, 256], sizes = [1, 128], strides = [1, 1]} : vector<1x512xf32> to vector<1x128xf32>
    %82 = math.tanh %81 : vector<1x128xf32>
    %83 = vector.extract_strided_slice %68 {offsets = [0, 384], sizes = [1, 128], strides = [1, 1]} : vector<1x512xf32> to vector<1x128xf32>
    %84 = arith.negf %83 : vector<1x128xf32>
    %85 = math.exp %84 : vector<1x128xf32>
    %cst_21 = arith.constant 1.000000e+00 : f32
    %86 = vector.broadcast %cst_21 : f32 to vector<1x128xf32>
    %87 = arith.addf %86, %85 : vector<1x128xf32>
    %88 = arith.divf %86, %87 : vector<1x128xf32>
    %89 = arith.mulf %80, %63 : vector<1x128xf32>
    %90 = arith.mulf %74, %82 : vector<1x128xf32>
    %91 = arith.addf %89, %90 : vector<1x128xf32>
    %92 = math.tanh %91 : vector<1x128xf32>
    %93 = arith.mulf %88, %92 : vector<1x128xf32>
    %94 = vector.extract_strided_slice %6 {offsets = [3, 0], sizes = [1, 512], strides = [1, 1]} : vector<8x512xf32> to vector<1x512xf32>
    %cst_22 = arith.constant dense<0.000000e+00> : vector<1x512xf32>
    %95 = tpu.matmul %93, %7, %cst_22 {dimension_numbers = #tpu.dot_dimension_numbers<[1], [0], [0], [1], [0, 0, 1, 1], [], []>} : vector<1x128xf32>, vector<128x512xf32>, vector<1x512xf32> -> vector<1x512xf32>
    %96 = arith.addf %94, %95 : vector<1x512xf32>
    %97 = vector.extract_strided_slice %96 {offsets = [0, 0], sizes = [1, 128], strides = [1, 1]} : vector<1x512xf32> to vector<1x128xf32>
    %98 = arith.negf %97 : vector<1x128xf32>
    %99 = math.exp %98 : vector<1x128xf32>
    %cst_23 = arith.constant 1.000000e+00 : f32
    %100 = vector.broadcast %cst_23 : f32 to vector<1x128xf32>
    %101 = arith.addf %100, %99 : vector<1x128xf32>
    %102 = arith.divf %100, %101 : vector<1x128xf32>
    %103 = vector.extract_strided_slice %96 {offsets = [0, 128], sizes = [1, 128], strides = [1, 1]} : vector<1x512xf32> to vector<1x128xf32>
    %104 = arith.negf %103 : vector<1x128xf32>
    %105 = math.exp %104 : vector<1x128xf32>
    %cst_24 = arith.constant 1.000000e+00 : f32
    %106 = vector.broadcast %cst_24 : f32 to vector<1x128xf32>
    %107 = arith.addf %106, %105 : vector<1x128xf32>
    %108 = arith.divf %106, %107 : vector<1x128xf32>
    %109 = vector.extract_strided_slice %96 {offsets = [0, 256], sizes = [1, 128], strides = [1, 1]} : vector<1x512xf32> to vector<1x128xf32>
    %110 = math.tanh %109 : vector<1x128xf32>
    %111 = vector.extract_strided_slice %96 {offsets = [0, 384], sizes = [1, 128], strides = [1, 1]} : vector<1x512xf32> to vector<1x128xf32>
    %112 = arith.negf %111 : vector<1x128xf32>
    %113 = math.exp %112 : vector<1x128xf32>
    %cst_25 = arith.constant 1.000000e+00 : f32
    %114 = vector.broadcast %cst_25 : f32 to vector<1x128xf32>
    %115 = arith.addf %114, %113 : vector<1x128xf32>
    %116 = arith.divf %114, %115 : vector<1x128xf32>
    %117 = arith.mulf %108, %91 : vector<1x128xf32>
    %118 = arith.mulf %102, %110 : vector<1x128xf32>
    %119 = arith.addf %117, %118 : vector<1x128xf32>
    %120 = math.tanh %119 : vector<1x128xf32>
    %121 = arith.mulf %116, %120 : vector<1x128xf32>
    %122 = vector.extract_strided_slice %6 {offsets = [4, 0], sizes = [1, 512], strides = [1, 1]} : vector<8x512xf32> to vector<1x512xf32>
    %cst_26 = arith.constant dense<0.000000e+00> : vector<1x512xf32>
    %123 = tpu.matmul %121, %7, %cst_26 {dimension_numbers = #tpu.dot_dimension_numbers<[1], [0], [0], [1], [0, 0, 1, 1], [], []>} : vector<1x128xf32>, vector<128x512xf32>, vector<1x512xf32> -> vector<1x512xf32>
    %124 = arith.addf %122, %123 : vector<1x512xf32>
    %125 = vector.extract_strided_slice %124 {offsets = [0, 0], sizes = [1, 128], strides = [1, 1]} : vector<1x512xf32> to vector<1x128xf32>
    %126 = arith.negf %125 : vector<1x128xf32>
    %127 = math.exp %126 : vector<1x128xf32>
    %cst_27 = arith.constant 1.000000e+00 : f32
    %128 = vector.broadcast %cst_27 : f32 to vector<1x128xf32>
    %129 = arith.addf %128, %127 : vector<1x128xf32>
    %130 = arith.divf %128, %129 : vector<1x128xf32>
    %131 = vector.extract_strided_slice %124 {offsets = [0, 128], sizes = [1, 128], strides = [1, 1]} : vector<1x512xf32> to vector<1x128xf32>
    %132 = arith.negf %131 : vector<1x128xf32>
    %133 = math.exp %132 : vector<1x128xf32>
    %cst_28 = arith.constant 1.000000e+00 : f32
    %134 = vector.broadcast %cst_28 : f32 to vector<1x128xf32>
    %135 = arith.addf %134, %133 : vector<1x128xf32>
    %136 = arith.divf %134, %135 : vector<1x128xf32>
    %137 = vector.extract_strided_slice %124 {offsets = [0, 256], sizes = [1, 128], strides = [1, 1]} : vector<1x512xf32> to vector<1x128xf32>
    %138 = math.tanh %137 : vector<1x128xf32>
    %139 = vector.extract_strided_slice %124 {offsets = [0, 384], sizes = [1, 128], strides = [1, 1]} : vector<1x512xf32> to vector<1x128xf32>
    %140 = arith.negf %139 : vector<1x128xf32>
    %141 = math.exp %140 : vector<1x128xf32>
    %cst_29 = arith.constant 1.000000e+00 : f32
    %142 = vector.broadcast %cst_29 : f32 to vector<1x128xf32>
    %143 = arith.addf %142, %141 : vector<1x128xf32>
    %144 = arith.divf %142, %143 : vector<1x128xf32>
    %145 = arith.mulf %136, %119 : vector<1x128xf32>
    %146 = arith.mulf %130, %138 : vector<1x128xf32>
    %147 = arith.addf %145, %146 : vector<1x128xf32>
    %148 = math.tanh %147 : vector<1x128xf32>
    %149 = arith.mulf %144, %148 : vector<1x128xf32>
    %150 = vector.extract_strided_slice %6 {offsets = [5, 0], sizes = [1, 512], strides = [1, 1]} : vector<8x512xf32> to vector<1x512xf32>
    %cst_30 = arith.constant dense<0.000000e+00> : vector<1x512xf32>
    %151 = tpu.matmul %149, %7, %cst_30 {dimension_numbers = #tpu.dot_dimension_numbers<[1], [0], [0], [1], [0, 0, 1, 1], [], []>} : vector<1x128xf32>, vector<128x512xf32>, vector<1x512xf32> -> vector<1x512xf32>
    %152 = arith.addf %150, %151 : vector<1x512xf32>
    %153 = vector.extract_strided_slice %152 {offsets = [0, 0], sizes = [1, 128], strides = [1, 1]} : vector<1x512xf32> to vector<1x128xf32>
    %154 = arith.negf %153 : vector<1x128xf32>
    %155 = math.exp %154 : vector<1x128xf32>
    %cst_31 = arith.constant 1.000000e+00 : f32
    %156 = vector.broadcast %cst_31 : f32 to vector<1x128xf32>
    %157 = arith.addf %156, %155 : vector<1x128xf32>
    %158 = arith.divf %156, %157 : vector<1x128xf32>
    %159 = vector.extract_strided_slice %152 {offsets = [0, 128], sizes = [1, 128], strides = [1, 1]} : vector<1x512xf32> to vector<1x128xf32>
    %160 = arith.negf %159 : vector<1x128xf32>
    %161 = math.exp %160 : vector<1x128xf32>
    %cst_32 = arith.constant 1.000000e+00 : f32
    %162 = vector.broadcast %cst_32 : f32 to vector<1x128xf32>
    %163 = arith.addf %162, %161 : vector<1x128xf32>
    %164 = arith.divf %162, %163 : vector<1x128xf32>
    %165 = vector.extract_strided_slice %152 {offsets = [0, 256], sizes = [1, 128], strides = [1, 1]} : vector<1x512xf32> to vector<1x128xf32>
    %166 = math.tanh %165 : vector<1x128xf32>
    %167 = vector.extract_strided_slice %152 {offsets = [0, 384], sizes = [1, 128], strides = [1, 1]} : vector<1x512xf32> to vector<1x128xf32>
    %168 = arith.negf %167 : vector<1x128xf32>
    %169 = math.exp %168 : vector<1x128xf32>
    %cst_33 = arith.constant 1.000000e+00 : f32
    %170 = vector.broadcast %cst_33 : f32 to vector<1x128xf32>
    %171 = arith.addf %170, %169 : vector<1x128xf32>
    %172 = arith.divf %170, %171 : vector<1x128xf32>
    %173 = arith.mulf %164, %147 : vector<1x128xf32>
    %174 = arith.mulf %158, %166 : vector<1x128xf32>
    %175 = arith.addf %173, %174 : vector<1x128xf32>
    %176 = math.tanh %175 : vector<1x128xf32>
    %177 = arith.mulf %172, %176 : vector<1x128xf32>
    %178 = vector.extract_strided_slice %6 {offsets = [6, 0], sizes = [1, 512], strides = [1, 1]} : vector<8x512xf32> to vector<1x512xf32>
    %cst_34 = arith.constant dense<0.000000e+00> : vector<1x512xf32>
    %179 = tpu.matmul %177, %7, %cst_34 {dimension_numbers = #tpu.dot_dimension_numbers<[1], [0], [0], [1], [0, 0, 1, 1], [], []>} : vector<1x128xf32>, vector<128x512xf32>, vector<1x512xf32> -> vector<1x512xf32>
    %180 = arith.addf %178, %179 : vector<1x512xf32>
    %181 = vector.extract_strided_slice %180 {offsets = [0, 0], sizes = [1, 128], strides = [1, 1]} : vector<1x512xf32> to vector<1x128xf32>
    %182 = arith.negf %181 : vector<1x128xf32>
    %183 = math.exp %182 : vector<1x128xf32>
    %cst_35 = arith.constant 1.000000e+00 : f32
    %184 = vector.broadcast %cst_35 : f32 to vector<1x128xf32>
    %185 = arith.addf %184, %183 : vector<1x128xf32>
    %186 = arith.divf %184, %185 : vector<1x128xf32>
    %187 = vector.extract_strided_slice %180 {offsets = [0, 128], sizes = [1, 128], strides = [1, 1]} : vector<1x512xf32> to vector<1x128xf32>
    %188 = arith.negf %187 : vector<1x128xf32>
    %189 = math.exp %188 : vector<1x128xf32>
    %cst_36 = arith.constant 1.000000e+00 : f32
    %190 = vector.broadcast %cst_36 : f32 to vector<1x128xf32>
    %191 = arith.addf %190, %189 : vector<1x128xf32>
    %192 = arith.divf %190, %191 : vector<1x128xf32>
    %193 = vector.extract_strided_slice %180 {offsets = [0, 256], sizes = [1, 128], strides = [1, 1]} : vector<1x512xf32> to vector<1x128xf32>
    %194 = math.tanh %193 : vector<1x128xf32>
    %195 = vector.extract_strided_slice %180 {offsets = [0, 384], sizes = [1, 128], strides = [1, 1]} : vector<1x512xf32> to vector<1x128xf32>
    %196 = arith.negf %195 : vector<1x128xf32>
    %197 = math.exp %196 : vector<1x128xf32>
    %cst_37 = arith.constant 1.000000e+00 : f32
    %198 = vector.broadcast %cst_37 : f32 to vector<1x128xf32>
    %199 = arith.addf %198, %197 : vector<1x128xf32>
    %200 = arith.divf %198, %199 : vector<1x128xf32>
    %201 = arith.mulf %192, %175 : vector<1x128xf32>
    %202 = arith.mulf %186, %194 : vector<1x128xf32>
    %203 = arith.addf %201, %202 : vector<1x128xf32>
    %204 = math.tanh %203 : vector<1x128xf32>
    %205 = arith.mulf %200, %204 : vector<1x128xf32>
    %206 = vector.extract_strided_slice %6 {offsets = [7, 0], sizes = [1, 512], strides = [1, 1]} : vector<8x512xf32> to vector<1x512xf32>
    %cst_38 = arith.constant dense<0.000000e+00> : vector<1x512xf32>
    %207 = tpu.matmul %205, %7, %cst_38 {dimension_numbers = #tpu.dot_dimension_numbers<[1], [0], [0], [1], [0, 0, 1, 1], [], []>} : vector<1x128xf32>, vector<128x512xf32>, vector<1x512xf32> -> vector<1x512xf32>
    %208 = arith.addf %206, %207 : vector<1x512xf32>
    %209 = vector.extract_strided_slice %208 {offsets = [0, 0], sizes = [1, 128], strides = [1, 1]} : vector<1x512xf32> to vector<1x128xf32>
    %210 = arith.negf %209 : vector<1x128xf32>
    %211 = math.exp %210 : vector<1x128xf32>
    %cst_39 = arith.constant 1.000000e+00 : f32
    %212 = vector.broadcast %cst_39 : f32 to vector<1x128xf32>
    %213 = arith.addf %212, %211 : vector<1x128xf32>
    %214 = arith.divf %212, %213 : vector<1x128xf32>
    %215 = vector.extract_strided_slice %208 {offsets = [0, 128], sizes = [1, 128], strides = [1, 1]} : vector<1x512xf32> to vector<1x128xf32>
    %216 = arith.negf %215 : vector<1x128xf32>
    %217 = math.exp %216 : vector<1x128xf32>
    %cst_40 = arith.constant 1.000000e+00 : f32
    %218 = vector.broadcast %cst_40 : f32 to vector<1x128xf32>
    %219 = arith.addf %218, %217 : vector<1x128xf32>
    %220 = arith.divf %218, %219 : vector<1x128xf32>
    %221 = vector.extract_strided_slice %208 {offsets = [0, 256], sizes = [1, 128], strides = [1, 1]} : vector<1x512xf32> to vector<1x128xf32>
    %222 = math.tanh %221 : vector<1x128xf32>
    %223 = vector.extract_strided_slice %208 {offsets = [0, 384], sizes = [1, 128], strides = [1, 1]} : vector<1x512xf32> to vector<1x128xf32>
    %224 = arith.negf %223 : vector<1x128xf32>
    %225 = math.exp %224 : vector<1x128xf32>
    %cst_41 = arith.constant 1.000000e+00 : f32
    %226 = vector.broadcast %cst_41 : f32 to vector<1x128xf32>
    %227 = arith.addf %226, %225 : vector<1x128xf32>
    %228 = arith.divf %226, %227 : vector<1x128xf32>
    %229 = arith.mulf %220, %203 : vector<1x128xf32>
    %230 = arith.mulf %214, %222 : vector<1x128xf32>
    %231 = arith.addf %229, %230 : vector<1x128xf32>
    %232 = math.tanh %231 : vector<1x128xf32>
    %233 = arith.mulf %228, %232 : vector<1x128xf32>
    %234 = tpu.concatenate %37, %65, %93, %121, %149, %177, %205, %233 in 0 : vector<1x128xf32>, vector<1x128xf32>, vector<1x128xf32>, vector<1x128xf32>, vector<1x128xf32>, vector<1x128xf32>, vector<1x128xf32>, vector<1x128xf32> -> vector<8x128xf32>
    %c0_42 = arith.constant 0 : index
    %c0_43 = arith.constant 0 : index
    %235 = vector.load %arg5[%c0_42, %c0_43] : memref<1x128xf32, #tpu.memory_space<vmem>>, vector<1x128xf32>
    %236 = vector.broadcast %235 : vector<1x128xf32> to vector<8x128xf32>
    %237 = arith.mulf %234, %236 : vector<8x128xf32>
    %cst_44 = arith.constant dense<0.000000e+00> : vector<8xf32>
    %238 = vector.multi_reduction <add>, %237, %cst_44 [1] : vector<8x128xf32> to vector<8xf32>
    %239 = vector.shape_cast %238 : vector<8xf32> to vector<8x1xf32>
    %c0_45 = arith.constant 0 : index
    %c0_46 = arith.constant 0 : index
    %240 = vector.load %arg6[%c0_45, %c0_46] : memref<1x1xf32, #tpu.memory_space<vmem>>, vector<1x1xf32>
    %241 = vector.broadcast %240 : vector<1x1xf32> to vector<8x1xf32>
    %242 = arith.addf %239, %241 : vector<8x1xf32>
    %c0_47 = arith.constant 0 : index
    %c0_48 = arith.constant 0 : index
    %c0_49 = arith.constant 0 : index
    %243 = vector.load %arg7[%c0_47, %c0_48, %c0_49] : memref<1x8x1xf32, #tpu.memory_space<vmem>>, vector<1x8x1xf32>
    %244 = vector.shape_cast %243 : vector<1x8x1xf32> to vector<8x1xf32>
    %245 = vector.shape_cast %242 : vector<8x1xf32> to vector<1x8x1xf32>
    tpu.vector_store %arg7[%c0_47, %c0_48, %c0_49], %245 {strides = array<i32>} : memref<1x8x1xf32, #tpu.memory_space<vmem>>, vector<1x8x1xf32>,
    return
  }
  func.func @transform_0(%arg0: i32) -> (i32, i32, i32) {
    %c0_i32 = arith.constant 0 : i32
    %c0_i32_0 = arith.constant 0 : i32
    %c0_i32_1 = arith.constant 0 : i32
    return %arg0, %c0_i32, %c0_i32_0 : i32, i32, i32
  }
  func.func @transform_1(%arg0: i32) -> (i32, i32) {
    %c0_i32 = arith.constant 0 : i32
    %c0_i32_0 = arith.constant 0 : i32
    %c0_i32_1 = arith.constant 0 : i32
    return %c0_i32, %c0_i32_0 : i32, i32
  }
  func.func @transform_2(%arg0: i32) -> (i32, i32) {
    %c0_i32 = arith.constant 0 : i32
    %c0_i32_0 = arith.constant 0 : i32
    %c0_i32_1 = arith.constant 0 : i32
    return %c0_i32, %c0_i32_0 : i32, i32
  }
  func.func @transform_3(%arg0: i32) -> (i32, i32) {
    %c0_i32 = arith.constant 0 : i32
    %c0_i32_0 = arith.constant 0 : i32
    %c0_i32_1 = arith.constant 0 : i32
    return %c0_i32, %c0_i32_0 : i32, i32
  }
  func.func @transform_4(%arg0: i32) -> (i32, i32) {
    %c0_i32 = arith.constant 0 : i32
    %c0_i32_0 = arith.constant 0 : i32
    %c0_i32_1 = arith.constant 0 : i32
    return %c0_i32, %c0_i32_0 : i32, i32
  }
  func.func @transform_5(%arg0: i32) -> (i32, i32) {
    %c0_i32 = arith.constant 0 : i32
    %c0_i32_0 = arith.constant 0 : i32
    %c0_i32_1 = arith.constant 0 : i32
    return %c0_i32, %c0_i32_0 : i32, i32
  }
  func.func @transform_6(%arg0: i32) -> (i32, i32, i32) {
    %c0_i32 = arith.constant 0 : i32
    %c0_i32_0 = arith.constant 0 : i32
    %c0_i32_1 = arith.constant 0 : i32
    return %arg0, %c0_i32, %c0_i32_0 : i32, i32, i32
  }
}

</mosaic_0001>

<bundles_post_ra>
// kernel: tpu_custom_call.1
= control target key start
LH: loop header
LB: loop body
LE: loop exit
PB: predicated region body
PF: predicated region fallthrough
CT: control target
= control target key end

     0   :  { %s3909_s0 = inlined_call_operand.hbm [shape: f32[2,8,256], index: 0, kind: input, shape index: {}]   ;;  %s3910_s1 = inlined_call_operand.hbm [shape: f32[256,512], index: 1, kind: input, shape index: {}]   ;;  %s3911_s2 = inlined_call_operand.hbm [shape: f32[128,512], index: 2, kind: input, shape index: {}]   ;;  %s3912_s3 = inlined_call_operand.vmem [shape: f32[1,512], index: 3, kind: input, shape index: {}]   ;;  %s3913_s4 = inlined_call_operand.vmem [shape: f32[1,128], index: 4, kind: input, shape index: {}]   ;;  %s3914_s5 = inlined_call_operand.<no memory space> [shape: f32[1,1], index: 5, kind: input, shape index: {}]   ;;  %s3915_s6 = inlined_call_operand.vmem [shape: f32[2,8,1], index: 6, kind: output, shape index: {}]  }
   0x1   :  { %v11_v0 = vstv %s3914_s5 }
   0x2   :  { %12 = vst [vmem:[#allocation2] sm:$0x1] %v11_v0 }
   0x3   :  { %13 = vsyncpa [#allocation4], 0 }
   0x4   :  { %15 = vsyncpa [#allocation4 + $0x1], 0 }
   0x5   :  { %16 = vsyncpa [#allocation6], 0  ;;  %s3301_s23 = smov 0   ;;  %s3303_s24 = smov 0  }
   0x6   :  { %s3305_s25 = smov 0   ;;  %s3307_s26 = smov 0  }
   0x7 LB: > { %s3320_s5 = sadd.s32 4294967295, %s3255_s26   ;;  %p42_p0 = scmp.ne.s32.totalorder %s3247_s24, %s3243_s23  ;;  %s3255_s26 = sphi %s3307_s26, %s3930_s26   ;;  %s3251_s25 = sphi %s3305_s25, %s3929_s25   ;;  %s3247_s24 = sphi %s3303_s24, %s3928_s24   ;;  %s3243_s23 = sphi %s3301_s23, %s3927_s23  }
   0x8   : > { %p3916_p1 = scmp.eq.s32.totalorder %s3320_s5, 0  ;;  %p2259_p2 = scmp.ge.s32.totalorder %s3255_s26, 1 }
   0x9   : > { %p184_p3 = scmp.lt.s32.totalorder %s3255_s26, 3  ;;  %s3257_s29 = smov [#allocation5]  }
   0xa   : > { %p3328_p4 = por %p3916_p1, %p42_p0  ;;  %s196_s30 = sshll.u32 %s3257_s29, 4  ;;  %s197_s30 = int_to_ptr.vmem [resolvable:$true] %s196_s30 }
   0xb   : > { %p3332_p5 = pnand %p2259_p2, %p184_p3  ;;  %s3258_s8 = smov [#allocation7]  }
   0xc   : > { %s3919_s27 = scalar_select %p3328_p4, 1, 0 }
   0xd   : > { %s3920_s28 = scalar_select %p3332_p5, 1, 0 }
   0xe   : > { %p2950_p6 = pneg %p3332_p5  ;;  %s209_s9 = sshll.u32 %s3258_s8, 4  ;;  %s3344_s9 = int_to_ptr.vmem [resolvable:$true] %s209_s9 }
   0xf   : > { %s3131_s12 = scalar_lea.hbm %s3910_s1, 16384 }
  0x10   : > { %p3340_p7 = pnand %p2950_p6, %p3916_p1  ;;  %p3132_p8 = scmp.ne.s32.totalorder %s3910_s1, %s3131_s12 }
  0x11   : > { %p3138_p12 = scmp.lt.u32.totalorder %s3131_s12, %s3910_s1 }
  0x12   : > { %p3133_p9 = pneg %p3340_p7 }
  0x14   : > { %p3134_p10 = pnand %p3133_p9, %p3132_p8 }
  0x16   : > { %p3135_p11 = pneg %p3134_p10 }
  0x18   : > { %p3140_p13 = pnand %p3138_p12, %p3135_p11 }
  0x1a   : > { %3143 = shalt.err (!%p3140_p13)
}
  0x1b   : > { %s3144_s17 = scalar_lea.vmem %s197_s30, 16384  ;;  %p3152_p6 = scmp.lt.s32.totalorder %s197_s30, %s197_s30 }
  0x1c   : > { %p3145_p0 = scmp.ne.s32.totalorder %s197_s30, %s3144_s17  ;;  %p3153_p1 = scmp.lt.s32.totalorder %s3144_s17, %s3144_s17 }
  0x1e   : > { %p3147_p2 = pnand %p3145_p0, %p3133_p9  ;;  %p3154_p4 = por %p3153_p1, %p3152_p6 }
  0x20   : > { %p3148_p3 = pneg %p3147_p2 }
  0x22   : > { %p3155_p5 = pnand %p3154_p4, %p3148_p3 }
  0x24   : > { %3158 = shalt.err (!%p3155_p5)
}
  0x25   : > { %s3259_s18 = smov 512   ;;  %s3260_s19 = smov 32  }
  0x26   : > { %2953 = dma.hbm_to_vmem [thread:$0]  (!%p3340_p7), %s3910_s1, 16384, %s197_s30, [#allocation6], %s3259_s18, %s3259_s18, %s3260_s19  }
  0x27   : > { %s3159_s29 = scalar_lea.hbm %s3911_s2, 8192 }
  0x28   : > { %p3160_p8 = scmp.ne.s32.totalorder %s3911_s2, %s3159_s29  ;;  %p3166_p5 = scmp.lt.u32.totalorder %s3159_s29, %s3911_s2 }
  0x2a   : > { %p3162_p1 = pnand %p3160_p8, %p3133_p9 }
  0x2c   : > { %p3163_p4 = pneg %p3162_p1 }
  0x2e   : > { %p3168_p10 = pnand %p3166_p5, %p3163_p4 }
  0x30   : > { %3171 = shalt.err (!%p3168_p10)
}
  0x31   : > { %s3172_s30 = scalar_lea.vmem %s3344_s9, 8192  ;;  %p3180_p0 = scmp.lt.s32.totalorder %s3344_s9, %s3344_s9 }
  0x32   : > { %p3173_p11 = scmp.ne.s32.totalorder %s3344_s9, %s3172_s30  ;;  %p3181_p2 = scmp.lt.s32.totalorder %s3172_s30, %s3172_s30 }
  0x34   : > { %p3175_p12 = pnand %p3173_p11, %p3133_p9  ;;  %p3182_p3 = por %p3181_p2, %p3180_p0 }
  0x36   : > { %p3176_p13 = pneg %p3175_p12 }
  0x38   : > { %p3183_p6 = pnand %p3182_p3, %p3176_p13 }
  0x3a   : > { %3186 = shalt.err (!%p3183_p6)
}
  0x3b   : > { %2956 = dma.hbm_to_vmem [thread:$0]  (!%p3340_p7), %s3911_s2, 8192, %s3344_s9, [#allocation6], %s3259_s18, %s3259_s18, %s3260_s19  }
  0x3c   : > { %s3394_s15 = sadd.s32 1, %s3255_s26   ;;  %s29_s16 = sadd.s32 1, %s3251_s25 }
  0x3d   : > { %s26_s7 = ssub.s32 %s3255_s26, %s3394_s15  ;;  %p36_p9 = scmp.ne.s32.totalorder %s3251_s25, %s3247_s24 }
  0x3e   : > { %p27_p8 = scmp.eq.s32.totalorder %s26_s7, 0  ;;  %p37_p1 = scmp.eq.s32.totalorder %s3255_s26, 0 }
  0x3f   : > { %p2963_p4 = scmp.lt.s32.totalorder %s3255_s26, 2  ;;  %s232_s17 = sand.u32 1, %s3251_s25  }
  0x40   : > { %s3405_s20 = scalar_select %p27_p8, %s3251_s25, %s29_s16  }
  0x41   : > { %p38_p5 = por %p37_p1, %p36_p9  ;;  %s2263_s21 = sshll.u32 %s232_s17, 4 }
  0x42   : > { %s2299_s22 = sshll.u32 %s3255_s26, 8  ;;  %s236_s9 = scalar_lea.vmem [#allocation3], %s2263_s21 }
  0x43   : > { %s3411_s8 = scalar_lea.hbm %s3909_s0, %s2299_s22  ;;  %s244_s18 = sshll.u32 %s236_s9, 4  ;;  %s3417_s18 = int_to_ptr.vmem [resolvable:$true] %s244_s18 }
  0x44   : > { %p3413_p7 = pnand %p2963_p4, %p38_p5  ;;  %s233_s26 = scalar_lea.sflag [#allocation4], %s232_s17 }
  0x45   : > { %s3187_s10 = scalar_lea.hbm %s3411_s8, 256  ;;  %s3192_s30 = scalar_lea.hbm %s3909_s0, 512 }
  0x46   : > { %p3188_p10 = scmp.ne.s32.totalorder %s3411_s8, %s3187_s10  ;;  %p3189_p11 = pneg %p3413_p7 }
  0x47   : > { %p3193_p0 = scmp.lt.u32.totalorder %s3411_s8, %s3909_s0  ;;  %p3194_p2 = scmp.lt.u32.totalorder %s3192_s30, %s3187_s10 }
  0x48   : > { %p3190_p12 = pnand %p3189_p11, %p3188_p10  ;;  %p3196_p6 = scmp.lt.u32.totalorder %s3187_s10, %s3411_s8 }
  0x49   : > { %p3195_p3 = por %p3194_p2, %p3193_p0 }
  0x4a   : > { %p3191_p13 = pneg %p3190_p12 }
  0x4b   : > { %p3197_p9 = por %p3196_p6, %p3195_p3 }
  0x4d   : > { %p3198_p8 = pnand %p3197_p9, %p3191_p13 }
  0x4f   : > { %3201 = shalt.err (!%p3198_p8)
}
  0x50   : > { %s3202_s16 = scalar_lea.vmem %s3417_s18, 256  ;;  %s3261_s7 = smov [#allocation3]  }
  0x51   : > { %p3203_p1 = scmp.ne.s32.totalorder %s3417_s18, %s3202_s16  ;;  %s3207_s17 = sshll.u32 %s3261_s7, 4  ;;  %s3208_s17 = int_to_ptr.vmem [resolvable:$false] %s3207_s17 }
  0x52   : > { %s3209_s21 = scalar_lea.vmem %s3208_s17, 512  ;;  %p3210_p10 = scmp.lt.s32.totalorder %s3417_s18, %s3208_s17 }
  0x53   : > { %p3205_p4 = pnand %p3203_p1, %p3189_p11  ;;  %p3211_p12 = scmp.lt.s32.totalorder %s3209_s21, %s3202_s16 }
  0x55   : > { %p3206_p5 = pneg %p3205_p4  ;;  %p3212_p0 = por %p3211_p12, %p3210_p10 }
  0x57   : > { %p3213_p2 = pnand %p3212_p0, %p3206_p5 }
  0x59   : > { %3216 = shalt.err (!%p3213_p2)
}
  0x5a   : > { %2960 = dma.hbm_to_vmem [thread:$0]  (!%p3413_p7), %s3411_s8, 256, %s3417_s18, %s233_s26  }
  0x5b   : > { %p3923_p13 = scmp.ne.s32.totalorder %s3920_s28, 0 }
  0x5c   : > { %s255_s22 = sand.u32 (!%p3923_p13), 1, %s3247_s24   ;;  %p3924_p11 = scmp.ne.s32.totalorder (!%p3923_p13), %s3919_s27, 0 }
  0x5d   : > { %253 = sbr.rel (%p3923_p13) target bundleno = 2442 (0x98a), region = 44  ;;  %s3447_s23 = sshll.u32 (!%p3923_p13), %s255_s22, 4 }
  0x5e   : > { %s256_s29 = scalar_lea.sflag (!%p3923_p13), [#allocation4], %s255_s22  ;;  %s259_s9 = scalar_lea.vmem (!%p3923_p13), [#allocation3], %s3447_s23 }
  0x64   : > { %3234 = dma.done.wait (%p3924_p11), %s256_s29, 256  }
  0x65   : > { %3236 = vsyncadd (%p3924_p11), %s256_s29, 4294967040  ;;  %p3925_p3 = scmp.eq.s32.totalorder %s3320_s5, 0 }
  0x67   : > { %3238 = dma.done.wait (%p3925_p3), [#allocation6], 24576   ;;  %p3926_p7 = pmov %p3925_p3 }
  0x68   : > { %v302_v1 = vld [vmem:[#allocation5 + $0x8] sm:$0xff]  ;;  %v304_v3 = vld [vmem:[#allocation5 + $0x18] sm:$0xff]  ;;  %v301_v6 = vld [vmem:[#allocation5] sm:$0xff]  ;;  %vm2140_vm0 = vcmask 1040384   ;;  %vm2142_vm1 = vcmask 1041408   ;;  %vm2144_vm2 = vcmask 1042432  }
  0x69   : > { %3240 = vsyncadd (%p3926_p7), [#allocation6], 4294942720  ;;  %v306_v2 = vld [vmem:[#allocation5 + $0x28] sm:$0xff]  ;;  %v308_v5 = vld [vmem:[#allocation5 + $0x38] sm:$0xff]  ;;  %vm2146_vm3 = vcmask 1043456   ;;  %vm2148_vm4 = vcmask 1044480  }
  0x6a   : > { %v2300_v4 = vpack.c.bf16 %v306_v2, %v302_v1  ;;  %v305_v7 = vld [vmem:[#allocation5 + $0x20] sm:$0xff]  ;;  %v2364_v8 = vpack.c.bf16 %v308_v5, %v304_v3  ;;  %v303_v10 = vld [vmem:[#allocation5 + $0x10] sm:$0xff]  ;;  %v310_v12 = vld [vmem:[#allocation5 + $0x48] sm:$0xff]  ;;  %vm2150_vm5 = vcmask 1045504   ;;  %vm2152_vm6 = vcmask 1046528   ;;  %p295_p6 = scmp.lt.s32.totalorder %s3320_s5, 1 }
  0x6b   : > { %v2302_v9 = vpack.c.bf16 %v305_v7, %v301_v6  ;;  %v307_v11 = vld [vmem:[#allocation5 + $0x30] sm:$0xff]  ;;  %v314_v14 = vld [vmem:[#allocation5 + $0x68] sm:$0xff]  ;;  %v312_v15 = vld [vmem:[#allocation5 + $0x58] sm:$0xff]  ;;  %vm2172_vm7 = vcmask 7168  }
  0x6c   : > { %2301 = vmatprep.subr.bf16.mxu0 %v2300_v4  ;;  %v2366_v13 = vpack.c.bf16 %v307_v11, %v303_v10  ;;  %v316_v16 = vld [vmem:[#allocation5 + $0x78] sm:$0xff]  ;;  %2365 = vmatprep.subr.bf16.mxu1 %v2364_v8  ;;  %v2304_v17 = vpack.c.bf16 %v314_v14, %v310_v12  ;;  %v309_v19 = vld [vmem:[#allocation5 + $0x40] sm:$0xff]  ;;  %v311_v21 = vld [vmem:[#allocation5 + $0x50] sm:$0xff]  ;;  %s3932_s5 = smov (!%p295_p6, %s3320_s5), 1 }
  0x6d   : > { %2303 = vmatpush1.bf16.msra.mxu0 %v2302_v9  ;;  %v2368_v18 = vpack.c.bf16 %v316_v16, %v312_v15  ;;  %v313_v20 = vld [vmem:[#allocation5 + $0x60] sm:$0xff]  ;;  %v315_v23 = vld [vmem:[#allocation5 + $0x70] sm:$0xff]  ;;  %v318_v24 = vld [vmem:[#allocation5 + $0x88] sm:$0xff]  ;;  %s2270_s19 = sshll.u32 %s3932_s5, 3 }
  0x6e   : > { %2367 = vmatpush1.bf16.msra.mxu1 %v2366_v13  ;;  %v2306_v22 = vpack.c.bf16 %v313_v20, %v309_v19  ;;  %v322_v25 = vld [vmem:[#allocation5 + $0xa8] sm:$0xff]  ;;  %2305 = vmatprep.subr.bf16.mxu0 %v2304_v17  ;;  %v2370_v26 = vpack.c.bf16 %v315_v23, %v311_v21  ;;  %v320_v28 = vld [vmem:[#allocation5 + $0x98] sm:$0xff]  ;;  %v317_v30 = vld [vmem:[#allocation5 + $0x80] sm:$0xff]  ;;  %s298_s11 = scalar_lea.vmem %s3915_s6, %s2270_s19 }
  0x6f   : > { %2369 = vmatprep.subr.bf16.mxu1 %v2368_v18  ;;  %v2308_v27 = vpack.c.bf16 %v322_v25, %v318_v24  ;;  %v324_v29 = vld [vmem:[#allocation5 + $0xb8] sm:$0xff]  ;;  %v321_v32 = vld [vmem:[#allocation5 + $0xa0] sm:$0xff]  ;;  %v319_v33 = vld [vmem:[#allocation5 + $0x90] sm:$0xff] }
  0x70   : > { %v2372_v31 = vpack.c.bf16 %v324_v29, %v320_v28  ;;  %v323_v34 = vld [vmem:[#allocation5 + $0xb0] sm:$0xff]  ;;  %v2310_v35 = vpack.c.bf16 %v321_v32, %v317_v30  ;;  %v326_v36 = vld [vmem:[#allocation5 + $0xc8] sm:$0xff]  ;;  %v328_v38 = vld [vmem:[#allocation5 + $0xd8] sm:$0xff] }
  0x71   : > { %2307 = vmatpush1.bf16.msra.mxu0 %v2306_v22  ;;  %v330_v37 = vld [vmem:[#allocation5 + $0xe8] sm:$0xff]  ;;  %v2374_v39 = vpack.c.bf16 %v323_v34, %v319_v33  ;;  %v332_v41 = vld [vmem:[#allocation5 + $0xf8] sm:$0xff]  ;;  %v325_v42 = vld [vmem:[#allocation5 + $0xc0] sm:$0xff] }
  0x72   : > { %2371 = vmatpush1.bf16.msra.mxu1 %v2370_v26  ;;  %2309 = vmatprep.subr.bf16.mxu0 %v2308_v27  ;;  %v2312_v40 = vpack.c.bf16 %v330_v37, %v326_v36  ;;  %v329_v43 = vld [vmem:[#allocation5 + $0xe0] sm:$0xff]  ;;  %v2376_v44 = vpack.c.bf16 %v332_v41, %v328_v38  ;;  %v327_v45 = vld [vmem:[#allocation5 + $0xd0] sm:$0xff]  ;;  %v334_v47 = vld [vmem:[#allocation5 + $0x108] sm:$0xff] }
  0x73   : > { %2373 = vmatprep.subr.bf16.mxu1 %v2372_v31  ;;  %v331_v46 = vld [vmem:[#allocation5 + $0xf0] sm:$0xff]  ;;  %v338_v48 = vld [vmem:[#allocation5 + $0x128] sm:$0xff]  ;;  %v336_v49 = vld [vmem:[#allocation5 + $0x118] sm:$0xff]  ;;  %v2314_v51 = vpack.c.bf16 %v329_v43, %v325_v42 }
  0x74   : > { %v340_v50 = vld [vmem:[#allocation5 + $0x138] sm:$0xff]  ;;  %v2378_v52 = vpack.c.bf16 %v331_v46, %v327_v45  ;;  %v2316_v53 = vpack.c.bf16 %v338_v48, %v334_v47  ;;  %v333_v54 = vld [vmem:[#allocation5 + $0x100] sm:$0xff]  ;;  %v335_v56 = vld [vmem:[#allocation5 + $0x110] sm:$0xff] }
  0x75   : > { %2311 = vmatpush1.bf16.msra.mxu0 %v2310_v35  ;;  %v337_v55 = vld [vmem:[#allocation5 + $0x120] sm:$0xff]  ;;  %v2380_v57 = vpack.c.bf16 %v340_v50, %v336_v49  ;;  %v339_v58 = vld [vmem:[#allocation5 + $0x130] sm:$0xff]  ;;  %v342_v59 = vld [vmem:[#allocation5 + $0x148] sm:$0xff] }
  0x76   : > { %2375 = vmatpush1.bf16.msra.mxu1 %v2374_v39  ;;  %2313 = vmatprep.subr.bf16.mxu0 %v2312_v40  ;;  %v346_v60 = vld [vmem:[#allocation5 + $0x168] sm:$0xff]  ;;  %v344_v61 = vld [vmem:[#allocation5 + $0x158] sm:$0xff]  ;;  %v2318_v63 = vpack.c.bf16 %v337_v55, %v333_v54  ;;  %v2382_v0 = vpack.c.bf16 %v339_v58, %v335_v56  ;;  %v341_v2 = vld [vmem:[#allocation5 + $0x140] sm:$0xff] }
  0x77   : > { %2377 = vmatprep.subr.bf16.mxu1 %v2376_v44  ;;  %v348_v62 = vld [vmem:[#allocation5 + $0x178] sm:$0xff]  ;;  %v2320_v1 = vpack.c.bf16 %v346_v60, %v342_v59  ;;  %v345_v3 = vld [vmem:[#allocation5 + $0x160] sm:$0xff]  ;;  %v343_v4 = vld [vmem:[#allocation5 + $0x150] sm:$0xff] }
  0x78   : > { %v2384_v5 = vpack.c.bf16 %v348_v62, %v344_v61  ;;  %v347_v6 = vld [vmem:[#allocation5 + $0x170] sm:$0xff]  ;;  %v350_v7 = vld [vmem:[#allocation5 + $0x188] sm:$0xff]  ;;  %v352_v9 = vld [vmem:[#allocation5 + $0x198] sm:$0xff]  ;;  %v2322_v11 = vpack.c.bf16 %v345_v3, %v341_v2 }
  0x79   : > { %2315 = vmatpush1.bf16.msra.mxu0 %v2314_v51  ;;  %v354_v8 = vld [vmem:[#allocation5 + $0x1a8] sm:$0xff]  ;;  %v356_v10 = vld [vmem:[#allocation5 + $0x1b8] sm:$0xff]  ;;  %v2386_v12 = vpack.c.bf16 %v347_v6, %v343_v4  ;;  %v349_v14 = vld [vmem:[#allocation5 + $0x180] sm:$0xff] }
  0x7a   : > { %2379 = vmatpush1.bf16.msra.mxu1 %v2378_v52  ;;  %2317 = vmatprep.subr.bf16.mxu0 %v2316_v53  ;;  %v2324_v13 = vpack.c.bf16 %v354_v8, %v350_v7  ;;  %v353_v15 = vld [vmem:[#allocation5 + $0x1a0] sm:$0xff]  ;;  %v351_v16 = vld [vmem:[#allocation5 + $0x190] sm:$0xff]  ;;  %v2388_v17 = vpack.c.bf16 %v356_v10, %v352_v9  ;;  %v358_v19 = vld [vmem:[#allocation5 + $0x1c8] sm:$0xff] }
  0x7b   : > { %2381 = vmatprep.subr.bf16.mxu1 %v2380_v57  ;;  %v355_v18 = vld [vmem:[#allocation5 + $0x1b0] sm:$0xff]  ;;  %v362_v20 = vld [vmem:[#allocation5 + $0x1e8] sm:$0xff]  ;;  %v360_v21 = vld [vmem:[#allocation5 + $0x1d8] sm:$0xff]  ;;  %v2326_v23 = vpack.c.bf16 %v353_v15, %v349_v14 }
  0x7c   : > { %v364_v22 = vld [vmem:[#allocation5 + $0x1f8] sm:$0xff]  ;;  %v2390_v24 = vpack.c.bf16 %v355_v18, %v351_v16  ;;  %v2328_v25 = vpack.c.bf16 %v362_v20, %v358_v19  ;;  %v357_v26 = vld [vmem:[#allocation5 + $0x1c0] sm:$0xff]  ;;  %v359_v28 = vld [vmem:[#allocation5 + $0x1d0] sm:$0xff] }
  0x7d   : > { %2319 = vmatpush1.bf16.msra.mxu0 %v2318_v63  ;;  %v361_v27 = vld [vmem:[#allocation5 + $0x1e0] sm:$0xff]  ;;  %v2392_v29 = vpack.c.bf16 %v364_v22, %v360_v21  ;;  %v363_v30 = vld [vmem:[#allocation5 + $0x1f0] sm:$0xff]  ;;  %v366_v31 = vld [vmem:[#allocation5 + $0x208] sm:$0xff] }
  0x7e   : > { %2383 = vmatpush1.bf16.msra.mxu1 %v2382_v0  ;;  %2321 = vmatprep.subr.bf16.mxu0 %v2320_v1  ;;  %v370_v32 = vld [vmem:[#allocation5 + $0x228] sm:$0xff]  ;;  %v368_v33 = vld [vmem:[#allocation5 + $0x218] sm:$0xff]  ;;  %v2330_v35 = vpack.c.bf16 %v361_v27, %v357_v26  ;;  %v2394_v36 = vpack.c.bf16 %v363_v30, %v359_v28  ;;  %v365_v38 = vld [vmem:[#allocation5 + $0x200] sm:$0xff] }
  0x7f   : > { %2385 = vmatprep.subr.bf16.mxu1 %v2384_v5  ;;  %v372_v34 = vld [vmem:[#allocation5 + $0x238] sm:$0xff]  ;;  %v2332_v37 = vpack.c.bf16 %v370_v32, %v366_v31  ;;  %v369_v39 = vld [vmem:[#allocation5 + $0x220] sm:$0xff]  ;;  %v367_v40 = vld [vmem:[#allocation5 + $0x210] sm:$0xff] }
  0x80   : > { %v2396_v41 = vpack.c.bf16 %v372_v34, %v368_v33  ;;  %v371_v42 = vld [vmem:[#allocation5 + $0x230] sm:$0xff]  ;;  %v374_v43 = vld [vmem:[#allocation5 + $0x248] sm:$0xff]  ;;  %v376_v45 = vld [vmem:[#allocation5 + $0x258] sm:$0xff]  ;;  %v2334_v47 = vpack.c.bf16 %v369_v39, %v365_v38 }
  0x81   : > { %2323 = vmatpush1.bf16.msra.mxu0 %v2322_v11  ;;  %v378_v44 = vld [vmem:[#allocation5 + $0x268] sm:$0xff]  ;;  %v380_v46 = vld [vmem:[#allocation5 + $0x278] sm:$0xff]  ;;  %v2398_v48 = vpack.c.bf16 %v371_v42, %v367_v40  ;;  %v373_v50 = vld [vmem:[#allocation5 + $0x240] sm:$0xff] }
  0x82   : > { %2387 = vmatpush1.bf16.msra.mxu1 %v2386_v12  ;;  %2325 = vmatprep.subr.bf16.mxu0 %v2324_v13  ;;  %v2336_v49 = vpack.c.bf16 %v378_v44, %v374_v43  ;;  %v377_v51 = vld [vmem:[#allocation5 + $0x260] sm:$0xff]  ;;  %v375_v52 = vld [vmem:[#allocation5 + $0x250] sm:$0xff]  ;;  %v2400_v53 = vpack.c.bf16 %v380_v46, %v376_v45  ;;  %v382_v55 = vld [vmem:[#allocation5 + $0x288] sm:$0xff] }
  0x83   : > { %2389 = vmatprep.subr.bf16.mxu1 %v2388_v17  ;;  %v379_v54 = vld [vmem:[#allocation5 + $0x270] sm:$0xff]  ;;  %v386_v56 = vld [vmem:[#allocation5 + $0x2a8] sm:$0xff]  ;;  %v384_v57 = vld [vmem:[#allocation5 + $0x298] sm:$0xff]  ;;  %v2338_v59 = vpack.c.bf16 %v377_v51, %v373_v50 }
  0x84   : > { %v388_v58 = vld [vmem:[#allocation5 + $0x2b8] sm:$0xff]  ;;  %v2402_v60 = vpack.c.bf16 %v379_v54, %v375_v52  ;;  %v2340_v61 = vpack.c.bf16 %v386_v56, %v382_v55  ;;  %v381_v62 = vld [vmem:[#allocation5 + $0x280] sm:$0xff]  ;;  %v383_v0 = vld [vmem:[#allocation5 + $0x290] sm:$0xff] }
  0x85   : > { %2327 = vmatpush1.bf16.msra.mxu0 %v2326_v23  ;;  %v385_v63 = vld [vmem:[#allocation5 + $0x2a0] sm:$0xff]  ;;  %v2404_v1 = vpack.c.bf16 %v388_v58, %v384_v57  ;;  %v387_v2 = vld [vmem:[#allocation5 + $0x2b0] sm:$0xff]  ;;  %v390_v3 = vld [vmem:[#allocation5 + $0x2c8] sm:$0xff] }
  0x86   : > { %2391 = vmatpush1.bf16.msra.mxu1 %v2390_v24  ;;  %2329 = vmatprep.subr.bf16.mxu0 %v2328_v25  ;;  %v394_v4 = vld [vmem:[#allocation5 + $0x2e8] sm:$0xff]  ;;  %v392_v5 = vld [vmem:[#allocation5 + $0x2d8] sm:$0xff]  ;;  %v2342_v7 = vpack.c.bf16 %v385_v63, %v381_v62  ;;  %v389_v8 = vld [vmem:[#allocation5 + $0x2c0] sm:$0xff]  ;;  %v2406_v9 = vpack.c.bf16 %v387_v2, %v383_v0 }
  0x87   : > { %2393 = vmatprep.subr.bf16.mxu1 %v2392_v29  ;;  %v396_v6 = vld [vmem:[#allocation5 + $0x2f8] sm:$0xff]  ;;  %v2344_v10 = vpack.c.bf16 %v394_v4, %v390_v3  ;;  %v393_v11 = vld [vmem:[#allocation5 + $0x2e0] sm:$0xff]  ;;  %v391_v12 = vld [vmem:[#allocation5 + $0x2d0] sm:$0xff] }
  0x88   : > { %v395_v13 = vld [vmem:[#allocation5 + $0x2f0] sm:$0xff]  ;;  %v2408_v14 = vpack.c.bf16 %v396_v6, %v392_v5  ;;  %v398_v15 = vld [vmem:[#allocation5 + $0x308] sm:$0xff]  ;;  %v400_v18 = vld [vmem:[#allocation5 + $0x318] sm:$0xff]  ;;  %v2346_v20 = vpack.c.bf16 %v393_v11, %v389_v8 }
  0x89   : > { %2331 = vmatpush1.bf16.msra.mxu0 %v2330_v35  ;;  %v402_v16 = vld [vmem:[#allocation5 + $0x328] sm:$0xff]  ;;  %v404_v19 = vld [vmem:[#allocation5 + $0x338] sm:$0xff]  ;;  %v2410_v21 = vpack.c.bf16 %v395_v13, %v391_v12  ;;  %v397_v23 = vld [vmem:[#allocation5 + $0x300] sm:$0xff] }
  0x8a   : > { %2395 = vmatpush1.bf16.msra.mxu1 %v2394_v36  ;;  %2333 = vmatprep.subr.bf16.mxu0 %v2332_v37  ;;  %v300_v17 = vld [vmem:[%s259_s9 + $0x8] sm:$0xff]  ;;  %v2348_v22 = vpack.c.bf16 %v402_v16, %v398_v15  ;;  %v401_v24 = vld [vmem:[#allocation5 + $0x320] sm:$0xff]  ;;  %v399_v25 = vld [vmem:[#allocation5 + $0x310] sm:$0xff]  ;;  %v2412_v26 = vpack.c.bf16 %v404_v19, %v400_v18 }
  0x8b   : > { %2397 = vmatprep.subr.bf16.mxu1 %v2396_v41  ;;  %515 = vmatprep.mubr.f32.mxu0 %v300_v17  ;;  %v403_v27 = vld [vmem:[#allocation5 + $0x330] sm:$0xff]  ;;  %v406_v28 = vld [vmem:[#allocation5 + $0x348] sm:$0xff]  ;;  %v408_v30 = vld [vmem:[#allocation5 + $0x358] sm:$0xff]  ;;  %v2350_v32 = vpack.c.bf16 %v401_v24, %v397_v23 }
  0x8c   : > { %586 = vmatprep.mubr.f32.mxu1 %v300_v17  ;;  %v410_v29 = vld [vmem:[#allocation5 + $0x368] sm:$0xff]  ;;  %v412_v31 = vld [vmem:[#allocation5 + $0x378] sm:$0xff]  ;;  %v2414_v33 = vpack.c.bf16 %v403_v27, %v399_v25  ;;  %v405_v35 = vld [vmem:[#allocation5 + $0x340] sm:$0xff] }
  0x8d   : > { %2335 = vmatpush1.bf16.msra.mxu0 %v2334_v47  ;;  %v2352_v34 = vpack.c.bf16 %v410_v29, %v406_v28  ;;  %v409_v36 = vld [vmem:[#allocation5 + $0x360] sm:$0xff]  ;;  %v407_v37 = vld [vmem:[#allocation5 + $0x350] sm:$0xff]  ;;  %v2416_v38 = vpack.c.bf16 %v412_v31, %v408_v30  ;;  %v414_v40 = vld [vmem:[#allocation5 + $0x388] sm:$0xff] }
  0x8e   : > { %2399 = vmatpush1.bf16.msra.mxu1 %v2398_v48  ;;  %2337 = vmatprep.subr.bf16.mxu0 %v2336_v49  ;;  %v411_v39 = vld [vmem:[#allocation5 + $0x370] sm:$0xff]  ;;  %v418_v41 = vld [vmem:[#allocation5 + $0x3a8] sm:$0xff]  ;;  %v416_v42 = vld [vmem:[#allocation5 + $0x398] sm:$0xff]  ;;  %v2354_v44 = vpack.c.bf16 %v409_v36, %v405_v35 }
  0x8f   : > { %2401 = vmatprep.subr.bf16.mxu1 %v2400_v53  ;;  %v420_v43 = vld [vmem:[#allocation5 + $0x3b8] sm:$0xff]  ;;  %v2418_v45 = vpack.c.bf16 %v411_v39, %v407_v37  ;;  %v2356_v46 = vpack.c.bf16 %v418_v41, %v414_v40  ;;  %v413_v47 = vld [vmem:[#allocation5 + $0x380] sm:$0xff]  ;;  %v415_v49 = vld [vmem:[#allocation5 + $0x390] sm:$0xff]  ;;  %v3262_v39 = vmov 0.0  }
  0x90   : > { %v417_v48 = vld [vmem:[#allocation5 + $0x3a0] sm:$0xff]  ;;  %v2420_v50 = vpack.c.bf16 %v420_v43, %v416_v42  ;;  %v419_v51 = vld [vmem:[#allocation5 + $0x3b0] sm:$0xff]  ;;  %v422_v52 = vld [vmem:[#allocation5 + $0x3c8] sm:$0xff] }
  0x91   : > { %2339 = vmatpush1.bf16.msra.mxu0 %v2338_v59  ;;  %v426_v53 = vld [vmem:[#allocation5 + $0x3e8] sm:$0xff]  ;;  %v424_v54 = vld [vmem:[#allocation5 + $0x3d8] sm:$0xff]  ;;  %v2358_v56 = vpack.c.bf16 %v417_v48, %v413_v47  ;;  %v2422_v57 = vpack.c.bf16 %v419_v51, %v415_v49  ;;  %v421_v59 = vld [vmem:[#allocation5 + $0x3c0] sm:$0xff] }
  0x92   : > { %2403 = vmatpush1.bf16.msra.mxu1 %v2402_v60  ;;  %2341 = vmatprep.subr.bf16.mxu0 %v2340_v61  ;;  %v428_v55 = vld [vmem:[#allocation5 + $0x3f8] sm:$0xff]  ;;  %v2360_v58 = vpack.c.bf16 %v426_v53, %v422_v52  ;;  %v425_v60 = vld [vmem:[#allocation5 + $0x3e0] sm:$0xff]  ;;  %v423_v61 = vld [vmem:[#allocation5 + $0x3d0] sm:$0xff] }
  0x93   : > { %2405 = vmatprep.subr.bf16.mxu1 %v2404_v1  ;;  %v2424_v62 = vpack.c.bf16 %v428_v55, %v424_v54  ;;  %v427_v63 = vld [vmem:[#allocation5 + $0x3f0] sm:$0xff]  ;;  %v594_v0 = vld [vmem:[#allocation7 + $0x8] sm:$0xff]  ;;  %v596_v2 = vld [vmem:[#allocation7 + $0x18] sm:$0xff]  ;;  %v2362_v4 = vpack.c.bf16 %v425_v60, %v421_v59 }
  0x94   : > { %v598_v1 = vld [vmem:[#allocation7 + $0x28] sm:$0xff]  ;;  %v600_v3 = vld [vmem:[#allocation7 + $0x38] sm:$0xff]  ;;  %v2426_v5 = vpack.c.bf16 %v427_v63, %v423_v61  ;;  %v597_v8 = vld [vmem:[#allocation7 + $0x20] sm:$0xff] }
  0x95   : > { %2343 = vmatpush1.bf16.msra.mxu0 %v2342_v7  ;;  %v3460_v6 = vpack.c.bf16 %v598_v1, %v594_v0  ;;  %v593_v7 = vld [vmem:[#allocation7] sm:$0xff]  ;;  %v599_v11 = vld [vmem:[#allocation7 + $0x30] sm:$0xff]  ;;  %v602_v12 = vld [vmem:[#allocation7 + $0x48] sm:$0xff] }
  0x96   : > { %2407 = vmatpush1.bf16.msra.mxu1 %v2406_v9  ;;  %2345 = vmatprep.subr.bf16.mxu0 %v2344_v10  ;;  %v595_v9 = vld [vmem:[#allocation7 + $0x10] sm:$0xff]  ;;  %v3462_v10 = vpack.c.bf16 %v600_v3, %v596_v2  ;;  %v606_v13 = vld [vmem:[#allocation7 + $0x68] sm:$0xff]  ;;  %v608_v15 = vld [vmem:[#allocation7 + $0x78] sm:$0xff]  ;;  %v3466_v17 = vpack.c.bf16 %v597_v8, %v593_v7 }
  0x97   : > { %2409 = vmatprep.subr.bf16.mxu1 %v2408_v14  ;;  %v604_v14 = vld [vmem:[#allocation7 + $0x58] sm:$0xff]  ;;  %v299_v16 = vld [vmem:[%s259_s9] sm:$0xff]  ;;  %v3469_v18 = vpack.c.bf16 %v599_v11, %v595_v9  ;;  %v3471_v19 = vpack.c.bf16 %v606_v13, %v602_v12  ;;  %v610_v25 = vld [vmem:[#allocation7 + $0x88] sm:$0xff] }
  0x98   : > { %v3474_v23 = vpack.c.bf16 %v608_v15, %v604_v14  ;;  %v607_v24 = vld [vmem:[#allocation7 + $0x70] sm:$0xff]  ;;  %v612_v27 = vld [vmem:[#allocation7 + $0x98] sm:$0xff]  ;;  %v618_v37 = vld [vmem:[#allocation7 + $0xc8] sm:$0xff] }
  0x99   : > { %2347 = vmatpush1.bf16.msra.mxu0 %v2346_v20  ;;  %v601_v20 = vld [vmem:[#allocation7 + $0x40] sm:$0xff]  ;;  %v616_v28 = vld [vmem:[#allocation7 + $0xb8] sm:$0xff]  ;;  %v615_v36 = vld [vmem:[#allocation7 + $0xb0] sm:$0xff] }
  0x9a   : > { %2411 = vmatpush1.bf16.msra.mxu1 %v2410_v21  ;;  %2349 = vmatprep.subr.bf16.mxu0 %v2348_v22  ;;  %v605_v21 = vld [vmem:[#allocation7 + $0x60] sm:$0xff]  ;;  %v603_v22 = vld [vmem:[#allocation7 + $0x50] sm:$0xff]  ;;  %v3486_v35 = vpack.c.bf16 %v616_v28, %v612_v27  ;;  %v620_v40 = vld [vmem:[#allocation7 + $0xd8] sm:$0xff] }
  0x9b   : > { %2413 = vmatprep.subr.bf16.mxu1 %v2412_v26  ;;  %v614_v26 = vld [vmem:[#allocation7 + $0xa8] sm:$0xff]  ;;  %v3477_v29 = vpack.c.bf16 %v605_v21, %v601_v20  ;;  %v3481_v30 = vpack.c.bf16 %v607_v24, %v603_v22  ;;  %v624_v41 = vld [vmem:[#allocation7 + $0xf8] sm:$0xff]  ;;  %v619_v47 = vld [vmem:[#allocation7 + $0xd0] sm:$0xff] }
  0x9c   : > { %v3483_v31 = vpack.c.bf16 %v614_v26, %v610_v25  ;;  %v3500_v48 = vpack.c.bf16 %v624_v41, %v620_v40  ;;  %v623_v49 = vld [vmem:[#allocation7 + $0xf0] sm:$0xff]  ;;  %v630_v51 = vld [vmem:[#allocation7 + $0x128] sm:$0xff]  ;;  %v628_v52 = vld [vmem:[#allocation7 + $0x118] sm:$0xff] }
  0x9d   : > { %2351 = vmatpush1.bf16.msra.mxu0 %v2350_v32  ;;  %v609_v32 = vld [vmem:[#allocation7 + $0x80] sm:$0xff]  ;;  %v632_v53 = vld [vmem:[#allocation7 + $0x138] sm:$0xff]  ;;  %v3507_v55 = vpack.c.bf16 %v623_v49, %v619_v47  ;;  %v627_v59 = vld [vmem:[#allocation7 + $0x110] sm:$0xff] }
  0x9e   : > { %2415 = vmatpush1.bf16.msra.mxu1 %v2414_v33  ;;  %2353 = vmatprep.subr.bf16.mxu0 %v2352_v34  ;;  %v613_v33 = vld [vmem:[#allocation7 + $0xa0] sm:$0xff]  ;;  %v611_v34 = vld [vmem:[#allocation7 + $0x90] sm:$0xff]  ;;  %v3512_v60 = vpack.c.bf16 %v632_v53, %v628_v52  ;;  %v638_v63 = vld [vmem:[#allocation7 + $0x168] sm:$0xff] }
  0x9f   : > { %2417 = vmatprep.subr.bf16.mxu1 %v2416_v38  ;;  %v622_v38 = vld [vmem:[#allocation7 + $0xe8] sm:$0xff]  ;;  %v3491_v42 = vpack.c.bf16 %v613_v33, %v609_v32  ;;  %v3495_v43 = vpack.c.bf16 %v615_v36, %v611_v34  ;;  %v631_v61 = vld [vmem:[#allocation7 + $0x130] sm:$0xff]  ;;  %v636_v0 = vld [vmem:[#allocation7 + $0x158] sm:$0xff] }
  0xa0   : > { %v640_v1 = vld [vmem:[#allocation7 + $0x178] sm:$0xff]  ;;  %v3519_v3 = vpack.c.bf16 %v631_v61, %v627_v59  ;;  %v637_v7 = vld [vmem:[#allocation7 + $0x160] sm:$0xff]  ;;  %v635_v8 = vld [vmem:[#allocation7 + $0x150] sm:$0xff] }
  0xa1   : > { %2355 = vmatpush1.bf16.msra.mxu0 %v2354_v44  ;;  %v3497_v44 = vpack.c.bf16 %v622_v38, %v618_v37  ;;  %v3524_v9 = vpack.c.bf16 %v640_v1, %v636_v0  ;;  %v639_v11 = vld [vmem:[#allocation7 + $0x170] sm:$0xff]  ;;  %v642_v12 = vld [vmem:[#allocation7 + $0x188] sm:$0xff]  ;;  %v644_v14 = vld [vmem:[#allocation7 + $0x198] sm:$0xff] }
  0xa2   : > { %2419 = vmatpush1.bf16.msra.mxu1 %v2418_v45  ;;  %2357 = vmatprep.subr.bf16.mxu0 %v2356_v46  ;;  %v617_v45 = vld [vmem:[#allocation7 + $0xc0] sm:$0xff]  ;;  %v646_v13 = vld [vmem:[#allocation7 + $0x1a8] sm:$0xff]  ;;  %v648_v15 = vld [vmem:[#allocation7 + $0x1b8] sm:$0xff]  ;;  %v3531_v20 = vpack.c.bf16 %v639_v11, %v635_v8 }
  0xa3   : > { %2421 = vmatprep.subr.bf16.mxu1 %v2420_v50  ;;  %v621_v46 = vld [vmem:[#allocation7 + $0xe0] sm:$0xff]  ;;  %v626_v50 = vld [vmem:[#allocation7 + $0x108] sm:$0xff]  ;;  %v3533_v21 = vpack.c.bf16 %v646_v13, %v642_v12  ;;  %v643_v25 = vld [vmem:[#allocation7 + $0x190] sm:$0xff]  ;;  %v3536_v26 = vpack.c.bf16 %v648_v15, %v644_v14 }
  0xa4   : > { %v3503_v54 = vpack.c.bf16 %v621_v46, %v617_v45  ;;  %v641_v22 = vld [vmem:[#allocation7 + $0x180] sm:$0xff]  ;;  %v647_v27 = vld [vmem:[#allocation7 + $0x1b0] sm:$0xff]  ;;  %v650_v28 = vld [vmem:[#allocation7 + $0x1c8] sm:$0xff] }
  0xa5   : > { %2359 = vmatpush1.bf16.msra.mxu0 %v2358_v56  ;;  %v3509_v56 = vpack.c.bf16 %v630_v51, %v626_v50  ;;  %v645_v24 = vld [vmem:[#allocation7 + $0x1a0] sm:$0xff]  ;;  %v654_v32 = vld [vmem:[#allocation7 + $0x1e8] sm:$0xff]  ;;  %v652_v33 = vld [vmem:[#allocation7 + $0x1d8] sm:$0xff]  ;;  %v3543_v37 = vpack.c.bf16 %v647_v27, %v643_v25 }
  0xa6   : > { %2423 = vmatpush1.bf16.msra.mxu1 %v2422_v57  ;;  %2361 = vmatprep.subr.bf16.mxu0 %v2360_v58  ;;  %v625_v57 = vld [vmem:[#allocation7 + $0x100] sm:$0xff]  ;;  %v656_v34 = vld [vmem:[#allocation7 + $0x1f8] sm:$0xff]  ;;  %v3539_v36 = vpack.c.bf16 %v645_v24, %v641_v22  ;;  %v3545_v38 = vpack.c.bf16 %v654_v32, %v650_v28  ;;  %v651_v46 = vld [vmem:[#allocation7 + $0x1d0] sm:$0xff] }
  0xa7   : > { %2425 = vmatprep.subr.bf16.mxu1 %v2424_v62  ;;  %v629_v58 = vld [vmem:[#allocation7 + $0x120] sm:$0xff]  ;;  %v634_v62 = vld [vmem:[#allocation7 + $0x148] sm:$0xff]  ;;  %v3548_v45 = vpack.c.bf16 %v656_v34, %v652_v33  ;;  %v655_v47 = vld [vmem:[#allocation7 + $0x1f0] sm:$0xff] }
  0xa8   : > { %v3515_v2 = vpack.c.bf16 %v629_v58, %v625_v57  ;;  %v649_v40 = vld [vmem:[#allocation7 + $0x1c0] sm:$0xff]  ;;  %v3555_v50 = vpack.c.bf16 %v655_v47, %v651_v46  ;;  %v431_v58 = vlaneseq }
  0xa9   : > { %2363 = vmatpush1.bf16.msra.mxu0 %v2362_v4  ;;  %v3521_v4 = vpack.c.bf16 %v638_v63, %v634_v62  ;;  %v653_v41 = vld [vmem:[#allocation7 + $0x1e0] sm:$0xff] }
  0xaa   : > { %2427 = vmatpush1.bf16.msra.mxu1 %v2426_v5  ;;  %2429 = vmatprep.subr.bf16.mxu0 %v3460_v6  ;;  %v633_v5 = vld [vmem:[#allocation7 + $0x140] sm:$0xff]  ;;  %v3551_v49 = vpack.c.bf16 %v653_v41, %v649_v40  ;;  %v432_v59 = vshrl.u32 %v431_v58, 7 }
  0xab   : > { %2461 = vmatprep.subr.bf16.mxu1 %v3462_v10  ;;  %v429_v62 = vld [vmem:[%s3912_s3] sm:$0xf] }
  0xac   : > { %516 = vmatmul.mubr.f32.vlgmr.msra.gmra.mrb[0].mxu0 %v299_v16  ;;  %v433_v61 = vsub.s32 0, %v432_v59  ;;  %v437_v63 = vsub.s32 1, %v432_v59  ;;  %v441_v25 = vsub.s32 2, %v432_v59 }
  0xad   : > { %587 = vmatmul.mubr.f32.vlgmr.msra.gmra.mrb[0].mxu1 %v299_v16  ;;  %2431 = vmatpush1.bf16.msra.mxu0 %v3466_v17  ;;  %v3527_v16 = vpack.c.bf16 %v637_v7, %v633_v5  ;;  %v445_v5 = vsub.s32 3, %v432_v59 }
  0xae   : > { %2463 = vmatpush1.bf16.msra.mxu1 %v3469_v18  ;;  %2433 = vmatprep.subr.bf16.mxu0 %v3471_v19  ;;  %v434_v0 = vrot.slane %v429_v62, %v433_v61  ;;  %v438_v1 = vrot.slane %v429_v62, %v437_v63  ;;  %v442_v33 = vrot.slane %v429_v62, %v441_v25 }
  0xaf   : > { %2465 = vmatprep.subr.bf16.mxu1 %v3474_v23  ;;  %721 = vmatprep.mubr.f32.mxu0 %v3262_v39  ;;  %v446_v15 = vrot.slane %v429_v62, %v445_v5 }
  0xb0   : > { %792 = vmatprep.mubr.f32.mxu1 %v3262_v39 }
  0xb1   : > { %2435 = vmatpush1.bf16.msra.mxu0 %v3477_v29 }
  0xb2   : > { %2467 = vmatpush1.bf16.msra.mxu1 %v3481_v30  ;;  %2437 = vmatprep.subr.bf16.mxu0 %v3483_v31 }
  0xb3   : > { %2469 = vmatprep.subr.bf16.mxu1 %v3486_v35 }
  0xb5   : > { %2439 = vmatpush1.bf16.msra.mxu0 %v3491_v42 }
  0xb6   : > { %2471 = vmatpush1.bf16.msra.mxu1 %v3495_v43  ;;  %2441 = vmatprep.subr.bf16.mxu0 %v3497_v44 }
  0xb7   : > { %2473 = vmatprep.subr.bf16.mxu1 %v3500_v48 }
  0xb9   : > { %2443 = vmatpush1.bf16.msra.mxu0 %v3503_v54 }
  0xba   : > { %2475 = vmatpush1.bf16.msra.mxu1 %v3507_v55  ;;  %2445 = vmatprep.subr.bf16.mxu0 %v3509_v56 }
  0xbb   : > { %2477 = vmatprep.subr.bf16.mxu1 %v3512_v60 }
  0xbd   : > { %2447 = vmatpush1.bf16.msra.mxu0 %v3515_v2 }
  0xbe   : > { %2479 = vmatpush1.bf16.msra.mxu1 %v3519_v3  ;;  %2449 = vmatprep.subr.bf16.mxu0 %v3521_v4 }
  0xbf   : > { %2481 = vmatprep.subr.bf16.mxu1 %v3524_v9 }
  0xc1   : > { %2451 = vmatpush1.bf16.msra.mxu0 %v3527_v16 }
  0xc2   : > { %2483 = vmatpush1.bf16.msra.mxu1 %v3531_v20  ;;  %2453 = vmatprep.subr.bf16.mxu0 %v3533_v21 }
  0xc3   : > { %2485 = vmatprep.subr.bf16.mxu1 %v3536_v26 }
  0xc5   : > { %2455 = vmatpush1.bf16.msra.mxu0 %v3539_v36 }
  0xc6   : > { %2487 = vmatpush1.bf16.msra.mxu1 %v3543_v37  ;;  %2457 = vmatprep.subr.bf16.mxu0 %v3545_v38 }
  0xc7   : > { %2489 = vmatprep.subr.bf16.mxu1 %v3548_v45 }
  0xc9   : > { %2459 = vmatpush1.bf16.msra.mxu0 %v3551_v49 }
  0xca   : > { %2491 = vmatpush1.bf16.msra.mxu1 %v3555_v50  ;;  %2493 = vmatprep.subr.bf16.mxu0 %v3460_v6 }
  0xcb   : > { %2525 = vmatprep.subr.bf16.mxu1 %v3462_v10 }
  0xcc   : > { %722 = vmatmul.mubr.f32.vlgmr.msra.gmra.mrb[2].mxu0 %v3262_v39 }
  0xcd   : > { %793 = vmatmul.mubr.f32.vlgmr.msra.gmra.mrb[2].mxu1 %v3262_v39  ;;  %2495 = vmatpush1.bf16.msra.mxu0 %v3466_v17 }
  0xce   : > { %2527 = vmatpush1.bf16.msra.mxu1 %v3469_v18  ;;  %2497 = vmatprep.subr.bf16.mxu0 %v3471_v19 }
  0xcf   : > { %2529 = vmatprep.subr.bf16.mxu1 %v3474_v23  ;;  %891 = vmatprep.mubr.f32.mxu0 %v3262_v39 }
  0xd0   : > { %962 = vmatprep.mubr.f32.mxu1 %v3262_v39 }
  0xd1   : > { %2499 = vmatpush1.bf16.msra.mxu0 %v3477_v29 }
  0xd2   : > { %2531 = vmatpush1.bf16.msra.mxu1 %v3481_v30  ;;  %2501 = vmatprep.subr.bf16.mxu0 %v3483_v31 }
  0xd3   : > { %2533 = vmatprep.subr.bf16.mxu1 %v3486_v35 }
  0xd5   : > { %2503 = vmatpush1.bf16.msra.mxu0 %v3491_v42 }
  0xd6   : > { %2535 = vmatpush1.bf16.msra.mxu1 %v3495_v43  ;;  %2505 = vmatprep.subr.bf16.mxu0 %v3497_v44 }
  0xd7   : > { %2537 = vmatprep.subr.bf16.mxu1 %v3500_v48 }
  0xd9   : > { %2507 = vmatpush1.bf16.msra.mxu0 %v3503_v54 }
  0xda   : > { %2539 = vmatpush1.bf16.msra.mxu1 %v3507_v55  ;;  %2509 = vmatprep.subr.bf16.mxu0 %v3509_v56 }
  0xdb   : > { %2541 = vmatprep.subr.bf16.mxu1 %v3512_v60 }
  0xdd   : > { %2511 = vmatpush1.bf16.msra.mxu0 %v3515_v2 }
  0xde   : > { %2543 = vmatpush1.bf16.msra.mxu1 %v3519_v3  ;;  %2513 = vmatprep.subr.bf16.mxu0 %v3521_v4 }
  0xdf   : > { %2545 = vmatprep.subr.bf16.mxu1 %v3524_v9 }
  0xe1   : > { %2515 = vmatpush1.bf16.msra.mxu0 %v3527_v16 }
  0xe2   : > { %2547 = vmatpush1.bf16.msra.mxu1 %v3531_v20  ;;  %2517 = vmatprep.subr.bf16.mxu0 %v3533_v21 }
  0xe3   : > { %2549 = vmatprep.subr.bf16.mxu1 %v3536_v26 }
  0xe5   : > { %2519 = vmatpush1.bf16.msra.mxu0 %v3539_v36 }
  0xe6   : > { %2551 = vmatpush1.bf16.msra.mxu1 %v3543_v37  ;;  %2521 = vmatprep.subr.bf16.mxu0 %v3545_v38 }
  0xe7   : > { %2553 = vmatprep.subr.bf16.mxu1 %v3548_v45 }
  0xe9   : > { %2523 = vmatpush1.bf16.msra.mxu0 %v3551_v49 }
  0xea   : > { %2555 = vmatpush1.bf16.msra.mxu1 %v3555_v50  ;;  %2557 = vmatprep.subr.bf16.mxu0 %v3460_v6 }
  0xeb   : > { %2589 = vmatprep.subr.bf16.mxu1 %v3462_v10 }
 0x17f   : > { %v517_v51 = vpop.f32.mrb[0].mxu0 }
 0x180   : > { %v519_v52 = vpop.f32.mrb[1].mxu0  ;;  %v588_v53 = vpop.f32.mrb[0].mxu1  ;;  %v3601_v7 = vadd.f32 %v517_v51, %v434_v0 }
 0x181   : > { %v590_v57 = vpop.f32.mrb[1].mxu1  ;;  %v3603_v8 = vadd.f32 %v519_v52, %v438_v1  ;;  %v3610_v40 = vadd.f32 %v588_v53, %v442_v33 }
 0x182   : > { %v3607_v32 = vadd.f32 %v590_v57, %v446_v15 }
 0x19f   : > { %v723_v11 = vpop.f32.mrb[2].mxu0 }
 0x1a0   : > { %v799_v12 = vadd.f32 %v723_v11, %v3601_v7  ;;  %v794_v13 = vpop.f32.mrb[2].mxu1  ;;  %v725_v14 = vpop.f32.mrb[3].mxu0 }
 0x1a1   : > { %v800_v22 = vadd.f32 %v725_v14, %v3603_v8  ;;  %v796_v24 = vpop.f32.mrb[3].mxu1  ;;  %v801_v46 = vadd.f32 %v794_v13, %v3610_v40 }
 0x1a2   : > { %v2271_v27 = vmul.f32 -1.442695, %v799_v12  ;;  %v802_v34 = vadd.f32 %v796_v24, %v3607_v32 }
 0x1a3   : > { %v2272_v28 = vmul.f32 -1.442695, %v800_v22 }
 0x1a4   : > { %3003 = vpow2.f32 %v2271_v27  ;;  %v2273_v41 = vmul.f32 -1.442695, %v802_v34 }
 0x1a5   : > { %3005 = vpow2.f32 %v2272_v28 }
 0x1a6   : > { %3007 = vpow2.f32 %v2273_v41 }
 0x1a7   : > { %3009 = vtanh.f32 %v801_v46 }
 0x1ae   : > { %v3004_v47 = vpop.eup %3003 }
 0x1af   : > { %v3006_v51 = vpop.eup %3005  ;;  %v806_v52 = vadd.f32 1.0, %v3004_v47 }
 0x1b0   : > { %v812_v58 = vadd.f32 1.0, %v3006_v51  ;;  %v3008_v59 = vpop.eup %3007 }
 0x1b1   : > { %3011 = vrcp.f32 %v806_v52  ;;  %v3010_v57 = vpop.eup %3009  ;;  %v819_v0 = vadd.f32 1.0, %v3008_v59 }
 0x1b2   : > { %3013 = vrcp.f32 %v812_v58 }
 0x1b3   : > { %3015 = vrcp.f32 %v819_v0 }
 0x1bb   : > { %v3012_v61 = vpop.eup %3011 }
 0x1bc   : > { %v3014_v63 = vpop.eup %3013  ;;  %v823_v62 = vmul.f32 %v3012_v61, %v3010_v57 }
 0x1bd   : > { %v822_v1 = vmul.f32 0.0, %v3014_v63  ;;  %v3016_v5 = vpop.eup %3015 }
 0x1bf   : > { %v3613_v53 = vadd.f32 %v823_v62, %v822_v1 }
 0x1c1   : > { %3017 = vtanh.f32 %v3613_v53  ;;  %v1005_v1 = vrot.slane %v3613_v53, 7 }
 0x1cb   : > { %v3018_v11 = vpop.eup %3017 }
 0x1cc   : > { %v3616_v12 = vmul.f32 %v3018_v11, %v3016_v5 }
 0x1ce   : > { %892 = vmatmul.mubr.f32.vlgmr.msra.gmra.mrb[4].mxu0 %v3616_v12  ;;  %963 = vmatmul.mubr.f32.vlgmr.msra.gmra.mrb[4].mxu1 %v3616_v12 }
 0x1cf   : > { %2559 = vmatpush1.bf16.msra.mxu0 %v3466_v17  ;;  %2591 = vmatpush1.bf16.msra.mxu1 %v3469_v18 }
 0x1d0   : > { %2561 = vmatprep.subr.bf16.mxu0 %v3471_v19  ;;  %2593 = vmatprep.subr.bf16.mxu1 %v3474_v23 }
 0x1d1   : > { %1079 = vmatprep.mubr.f32.mxu0 %v3262_v39  ;;  %1150 = vmatprep.mubr.f32.mxu1 %v3262_v39 }
 0x1d3   : > { %2563 = vmatpush1.bf16.msra.mxu0 %v3477_v29  ;;  %2595 = vmatpush1.bf16.msra.mxu1 %v3481_v30 }
 0x1d4   : > { %2565 = vmatprep.subr.bf16.mxu0 %v3483_v31  ;;  %2597 = vmatprep.subr.bf16.mxu1 %v3486_v35 }
 0x1d7   : > { %2567 = vmatpush1.bf16.msra.mxu0 %v3491_v42  ;;  %2599 = vmatpush1.bf16.msra.mxu1 %v3495_v43 }
 0x1d8   : > { %2569 = vmatprep.subr.bf16.mxu0 %v3497_v44  ;;  %2601 = vmatprep.subr.bf16.mxu1 %v3500_v48 }
 0x1db   : > { %2571 = vmatpush1.bf16.msra.mxu0 %v3503_v54  ;;  %2603 = vmatpush1.bf16.msra.mxu1 %v3507_v55 }
 0x1dc   : > { %2573 = vmatprep.subr.bf16.mxu0 %v3509_v56  ;;  %2605 = vmatprep.subr.bf16.mxu1 %v3512_v60 }
 0x1df   : > { %2575 = vmatpush1.bf16.msra.mxu0 %v3515_v2  ;;  %2607 = vmatpush1.bf16.msra.mxu1 %v3519_v3 }
 0x1e0   : > { %2577 = vmatprep.subr.bf16.mxu0 %v3521_v4  ;;  %2609 = vmatprep.subr.bf16.mxu1 %v3524_v9 }
 0x1e3   : > { %2579 = vmatpush1.bf16.msra.mxu0 %v3527_v16  ;;  %2611 = vmatpush1.bf16.msra.mxu1 %v3531_v20 }
 0x1e4   : > { %2581 = vmatprep.subr.bf16.mxu0 %v3533_v21  ;;  %2613 = vmatprep.subr.bf16.mxu1 %v3536_v26 }
 0x1e7   : > { %2583 = vmatpush1.bf16.msra.mxu0 %v3539_v36  ;;  %2615 = vmatpush1.bf16.msra.mxu1 %v3543_v37 }
 0x1e8   : > { %2585 = vmatprep.subr.bf16.mxu0 %v3545_v38  ;;  %2617 = vmatprep.subr.bf16.mxu1 %v3548_v45 }
 0x1eb   : > { %2587 = vmatpush1.bf16.msra.mxu0 %v3551_v49  ;;  %2619 = vmatpush1.bf16.msra.mxu1 %v3555_v50 }
 0x1ec   : > { %2621 = vmatprep.subr.bf16.mxu0 %v3460_v6  ;;  %2653 = vmatprep.subr.bf16.mxu1 %v3462_v10 }
 0x2a1   : > { %v893_v13 = vpop.f32.mrb[4].mxu0  ;;  %v964_v14 = vpop.f32.mrb[4].mxu1 }
 0x2a2   : > { %v973_v15 = vrot.slane %v893_v13, 7  ;;  %v895_v22 = vpop.f32.mrb[5].mxu0  ;;  %v966_v24 = vpop.f32.mrb[5].mxu1  ;;  %v975_v47 = vrot.slane %v964_v14, 7 }
 0x2a3   : > { %v974_v25 = vrot.slane %v895_v22, 7  ;;  %v976_v41 = vrot.slane %v966_v24, 7 }
 0x2a4   : > { %v981_v27 = vadd.f32 %v973_v15, %v3601_v7  ;;  %v983_v52 = vadd.f32 %v975_v47, %v3610_v40 }
 0x2a5   : > { %v982_v28 = vadd.f32 %v974_v25, %v3603_v8  ;;  %v984_v46 = vadd.f32 %v976_v41, %v3607_v32 }
 0x2a6   : > { %v2274_v33 = vmul.f32 -1.442695, %v981_v27 }
 0x2a7   : > { %v2275_v34 = vmul.f32 -1.442695, %v982_v28  ;;  %v2276_v51 = vmul.f32 -1.442695, %v984_v46 }
 0x2a8   : > { %3019 = vpow2.f32 %v2274_v33 }
 0x2a9   : > { %3021 = vpow2.f32 %v2275_v34 }
 0x2aa   : > { %3023 = vpow2.f32 %v2276_v51 }
 0x2ab   : > { %3025 = vtanh.f32 %v983_v52 }
 0x2b2   : > { %v3020_v58 = vpop.eup %3019 }
 0x2b3   : > { %v3022_v59 = vpop.eup %3021  ;;  %v988_v57 = vadd.f32 1.0, %v3020_v58 }
 0x2b4   : > { %v994_v61 = vadd.f32 1.0, %v3022_v59  ;;  %v3024_v63 = vpop.eup %3023 }
 0x2b5   : > { %3027 = vrcp.f32 %v988_v57  ;;  %v3026_v62 = vpop.eup %3025  ;;  %v1001_v13 = vadd.f32 1.0, %v3024_v63 }
 0x2b6   : > { %3029 = vrcp.f32 %v994_v61 }
 0x2b7   : > { %3031 = vrcp.f32 %v1001_v13 }
 0x2bf   : > { %v3028_v0 = vpop.eup %3027 }
 0x2c0   : > { %v3030_v5 = vpop.eup %3029  ;;  %v1008_v11 = vmul.f32 %v3028_v0, %v3026_v62 }
 0x2c1   : > { %v1007_v14 = vmul.f32 %v3030_v5, %v1005_v1  ;;  %v3032_v22 = vpop.eup %3031 }
 0x2c3   : > { %v3659_v15 = vadd.f32 %v1008_v11, %v1007_v14 }
 0x2c5   : > { %3033 = vtanh.f32 %v3659_v15 }
 0x2cf   : > { %v3034_v24 = vpop.eup %3033 }
 0x2d0   : > { %v3662_v25 = vmul.f32 %v3034_v24, %v3032_v22  ;;  %v1193_v24 = vrot.slane %v3659_v15, 7 }
 0x2d2   : > { %v1013_v27 = vrot.slane %v3662_v25, 1 }
 0x2d4   : > { %1080 = vmatmul.mubr.f32.vlgmr.msra.gmra.mrb[6].mxu0 %v1013_v27  ;;  %1151 = vmatmul.mubr.f32.vlgmr.msra.gmra.mrb[6].mxu1 %v1013_v27 }
 0x2d5   : > { %2623 = vmatpush1.bf16.msra.mxu0 %v3466_v17  ;;  %2655 = vmatpush1.bf16.msra.mxu1 %v3469_v18 }
 0x2d6   : > { %2625 = vmatprep.subr.bf16.mxu0 %v3471_v19  ;;  %2657 = vmatprep.subr.bf16.mxu1 %v3474_v23 }
 0x2d7   : > { %1267 = vmatprep.mubr.f32.mxu0 %v3262_v39  ;;  %1338 = vmatprep.mubr.f32.mxu1 %v3262_v39 }
 0x2d9   : > { %2627 = vmatpush1.bf16.msra.mxu0 %v3477_v29  ;;  %2659 = vmatpush1.bf16.msra.mxu1 %v3481_v30 }
 0x2da   : > { %2629 = vmatprep.subr.bf16.mxu0 %v3483_v31  ;;  %2661 = vmatprep.subr.bf16.mxu1 %v3486_v35 }
 0x2dd   : > { %2631 = vmatpush1.bf16.msra.mxu0 %v3491_v42  ;;  %2663 = vmatpush1.bf16.msra.mxu1 %v3495_v43 }
 0x2de   : > { %2633 = vmatprep.subr.bf16.mxu0 %v3497_v44  ;;  %2665 = vmatprep.subr.bf16.mxu1 %v3500_v48 }
 0x2e1   : > { %2635 = vmatpush1.bf16.msra.mxu0 %v3503_v54  ;;  %2667 = vmatpush1.bf16.msra.mxu1 %v3507_v55 }
 0x2e2   : > { %2637 = vmatprep.subr.bf16.mxu0 %v3509_v56  ;;  %2669 = vmatprep.subr.bf16.mxu1 %v3512_v60 }
 0x2e5   : > { %2639 = vmatpush1.bf16.msra.mxu0 %v3515_v2  ;;  %2671 = vmatpush1.bf16.msra.mxu1 %v3519_v3 }
 0x2e6   : > { %2641 = vmatprep.subr.bf16.mxu0 %v3521_v4  ;;  %2673 = vmatprep.subr.bf16.mxu1 %v3524_v9 }
 0x2e9   : > { %2643 = vmatpush1.bf16.msra.mxu0 %v3527_v16  ;;  %2675 = vmatpush1.bf16.msra.mxu1 %v3531_v20 }
 0x2ea   : > { %2645 = vmatprep.subr.bf16.mxu0 %v3533_v21  ;;  %2677 = vmatprep.subr.bf16.mxu1 %v3536_v26 }
 0x2ed   : > { %2647 = vmatpush1.bf16.msra.mxu0 %v3539_v36  ;;  %2679 = vmatpush1.bf16.msra.mxu1 %v3543_v37 }
 0x2ee   : > { %2649 = vmatprep.subr.bf16.mxu0 %v3545_v38  ;;  %2681 = vmatprep.subr.bf16.mxu1 %v3548_v45 }
 0x2f1   : > { %2651 = vmatpush1.bf16.msra.mxu0 %v3551_v49  ;;  %2683 = vmatpush1.bf16.msra.mxu1 %v3555_v50 }
 0x2f2   : > { %2685 = vmatprep.subr.bf16.mxu0 %v3460_v6  ;;  %2717 = vmatprep.subr.bf16.mxu1 %v3462_v10 }
 0x3a7   : > { %v1081_v53 = vpop.f32.mrb[6].mxu0  ;;  %v1152_v28 = vpop.f32.mrb[6].mxu1 }
 0x3a8   : > { %v1161_v33 = vrot.slane %v1081_v53, 6  ;;  %v1083_v34 = vpop.f32.mrb[7].mxu0  ;;  %v1154_v41 = vpop.f32.mrb[7].mxu1  ;;  %v1163_v61 = vrot.slane %v1152_v28, 6 }
 0x3a9   : > { %v1162_v46 = vrot.slane %v1083_v34, 6  ;;  %v1164_v59 = vrot.slane %v1154_v41, 6 }
 0x3aa   : > { %v1169_v47 = vadd.f32 %v1161_v33, %v3601_v7  ;;  %v1171_v62 = vadd.f32 %v1163_v61, %v3610_v40 }
 0x3ab   : > { %v1170_v51 = vadd.f32 %v1162_v46, %v3603_v8  ;;  %v1172_v57 = vadd.f32 %v1164_v59, %v3607_v32 }
 0x3ac   : > { %v2277_v52 = vmul.f32 -1.442695, %v1169_v47 }
 0x3ad   : > { %v2278_v58 = vmul.f32 -1.442695, %v1170_v51  ;;  %v2279_v63 = vmul.f32 -1.442695, %v1172_v57  ;;  %v2141_v51 = vsel %vm2140_vm0, %v3616_v12, %v3662_v25 }
 0x3ae   : > { %3035 = vpow2.f32 %v2277_v52 }
 0x3af   : > { %3037 = vpow2.f32 %v2278_v58 }
 0x3b0   : > { %3039 = vpow2.f32 %v2279_v63 }
 0x3b1   : > { %3041 = vtanh.f32 %v1171_v62 }
 0x3b8   : > { %v3036_v0 = vpop.eup %3035 }
 0x3b9   : > { %v3038_v1 = vpop.eup %3037  ;;  %v1176_v5 = vadd.f32 1.0, %v3036_v0 }
 0x3ba   : > { %v1182_v11 = vadd.f32 1.0, %v3038_v1  ;;  %v3040_v13 = vpop.eup %3039 }
 0x3bb   : > { %3043 = vrcp.f32 %v1176_v5  ;;  %v3042_v14 = vpop.eup %3041  ;;  %v1189_v33 = vadd.f32 1.0, %v3040_v13 }
 0x3bc   : > { %3045 = vrcp.f32 %v1182_v11 }
 0x3bd   : > { %3047 = vrcp.f32 %v1189_v33 }
 0x3c5   : > { %v3044_v22 = vpop.eup %3043 }
 0x3c6   : > { %v3046_v27 = vpop.eup %3045  ;;  %v1196_v53 = vmul.f32 %v3044_v22, %v3042_v14 }
 0x3c7   : > { %v1195_v28 = vmul.f32 %v3046_v27, %v1193_v24  ;;  %v3048_v41 = vpop.eup %3047 }
 0x3c9   : > { %v3704_v34 = vadd.f32 %v1196_v53, %v1195_v28 }
 0x3cb   : > { %3049 = vtanh.f32 %v3704_v34 }
 0x3d5   : > { %v3050_v46 = vpop.eup %3049 }
 0x3d6   : > { %v1199_v47 = vmul.f32 %v3050_v46, %v3048_v41 }
 0x3d8   : > { %v1201_v52 = vrot.slane %v1199_v47, 2  ;;  %v3709_v58 = vsel %vm2142_vm1, %v2141_v51, %v1199_v47  ;;  %v1381_v47 = vrot.slane %v3704_v34, 7 }
 0x3da   : > { %1268 = vmatmul.mubr.f32.vlgmr.msra.gmra.mrb[8].mxu0 %v1201_v52  ;;  %1339 = vmatmul.mubr.f32.vlgmr.msra.gmra.mrb[8].mxu1 %v1201_v52 }
 0x3db   : > { %2687 = vmatpush1.bf16.msra.mxu0 %v3466_v17  ;;  %2719 = vmatpush1.bf16.msra.mxu1 %v3469_v18 }
 0x3dc   : > { %2689 = vmatprep.subr.bf16.mxu0 %v3471_v19  ;;  %2721 = vmatprep.subr.bf16.mxu1 %v3474_v23 }
 0x3dd   : > { %1455 = vmatprep.mubr.f32.mxu0 %v3262_v39  ;;  %1526 = vmatprep.mubr.f32.mxu1 %v3262_v39 }
 0x3df   : > { %2691 = vmatpush1.bf16.msra.mxu0 %v3477_v29  ;;  %2723 = vmatpush1.bf16.msra.mxu1 %v3481_v30 }
 0x3e0   : > { %2693 = vmatprep.subr.bf16.mxu0 %v3483_v31  ;;  %2725 = vmatprep.subr.bf16.mxu1 %v3486_v35 }
 0x3e3   : > { %2695 = vmatpush1.bf16.msra.mxu0 %v3491_v42  ;;  %2727 = vmatpush1.bf16.msra.mxu1 %v3495_v43 }
 0x3e4   : > { %2697 = vmatprep.subr.bf16.mxu0 %v3497_v44  ;;  %2729 = vmatprep.subr.bf16.mxu1 %v3500_v48 }
 0x3e7   : > { %2699 = vmatpush1.bf16.msra.mxu0 %v3503_v54  ;;  %2731 = vmatpush1.bf16.msra.mxu1 %v3507_v55 }
 0x3e8   : > { %2701 = vmatprep.subr.bf16.mxu0 %v3509_v56  ;;  %2733 = vmatprep.subr.bf16.mxu1 %v3512_v60 }
 0x3eb   : > { %2703 = vmatpush1.bf16.msra.mxu0 %v3515_v2  ;;  %2735 = vmatpush1.bf16.msra.mxu1 %v3519_v3 }
 0x3ec   : > { %2705 = vmatprep.subr.bf16.mxu0 %v3521_v4  ;;  %2737 = vmatprep.subr.bf16.mxu1 %v3524_v9 }
 0x3ef   : > { %2707 = vmatpush1.bf16.msra.mxu0 %v3527_v16  ;;  %2739 = vmatpush1.bf16.msra.mxu1 %v3531_v20 }
 0x3f0   : > { %2709 = vmatprep.subr.bf16.mxu0 %v3533_v21  ;;  %2741 = vmatprep.subr.bf16.mxu1 %v3536_v26 }
 0x3f3   : > { %2711 = vmatpush1.bf16.msra.mxu0 %v3539_v36  ;;  %2743 = vmatpush1.bf16.msra.mxu1 %v3543_v37 }
 0x3f4   : > { %2713 = vmatprep.subr.bf16.mxu0 %v3545_v38  ;;  %2745 = vmatprep.subr.bf16.mxu1 %v3548_v45 }
 0x3f7   : > { %2715 = vmatpush1.bf16.msra.mxu0 %v3551_v49  ;;  %2747 = vmatpush1.bf16.msra.mxu1 %v3555_v50 }
 0x3f8   : > { %2749 = vmatprep.subr.bf16.mxu0 %v3460_v6  ;;  %2781 = vmatprep.subr.bf16.mxu1 %v3462_v10 }
 0x4ad   : > { %v1269_v12 = vpop.f32.mrb[8].mxu0  ;;  %v1340_v15 = vpop.f32.mrb[8].mxu1 }
 0x4ae   : > { %v1349_v25 = vrot.slane %v1269_v12, 5  ;;  %v1271_v59 = vpop.f32.mrb[9].mxu0  ;;  %v1342_v57 = vpop.f32.mrb[9].mxu1  ;;  %v1351_v13 = vrot.slane %v1340_v15, 5 }
 0x4af   : > { %v1350_v61 = vrot.slane %v1271_v59, 5  ;;  %v1352_v5 = vrot.slane %v1342_v57, 5 }
 0x4b0   : > { %v1357_v63 = vadd.f32 %v1349_v25, %v3601_v7  ;;  %v1359_v22 = vadd.f32 %v1351_v13, %v3610_v40 }
 0x4b1   : > { %v1358_v62 = vadd.f32 %v1350_v61, %v3603_v8  ;;  %v1360_v11 = vadd.f32 %v1352_v5, %v3607_v32 }
 0x4b2   : > { %v2280_v0 = vmul.f32 -1.442695, %v1357_v63 }
 0x4b3   : > { %v2281_v1 = vmul.f32 -1.442695, %v1358_v62  ;;  %v2282_v14 = vmul.f32 -1.442695, %v1360_v11 }
 0x4b4   : > { %3051 = vpow2.f32 %v2280_v0 }
 0x4b5   : > { %3053 = vpow2.f32 %v2281_v1 }
 0x4b6   : > { %3055 = vpow2.f32 %v2282_v14 }
 0x4b7   : > { %3057 = vtanh.f32 %v1359_v22 }
 0x4be   : > { %v3052_v24 = vpop.eup %3051 }
 0x4bf   : > { %v3054_v27 = vpop.eup %3053  ;;  %v1364_v53 = vadd.f32 1.0, %v3052_v24 }
 0x4c0   : > { %v1370_v33 = vadd.f32 1.0, %v3054_v27  ;;  %v3056_v28 = vpop.eup %3055 }
 0x4c1   : > { %3059 = vrcp.f32 %v1364_v53  ;;  %v3058_v41 = vpop.eup %3057  ;;  %v1377_v12 = vadd.f32 1.0, %v3056_v28 }
 0x4c2   : > { %3061 = vrcp.f32 %v1370_v33 }
 0x4c3   : > { %3063 = vrcp.f32 %v1377_v12 }
 0x4cb   : > { %v3060_v46 = vpop.eup %3059 }
 0x4cc   : > { %v3062_v51 = vpop.eup %3061  ;;  %v1384_v52 = vmul.f32 %v3060_v46, %v3058_v41 }
 0x4cd   : > { %v1383_v15 = vmul.f32 %v3062_v51, %v1381_v47  ;;  %v3064_v59 = vpop.eup %3063 }
 0x4cf   : > { %v3750_v25 = vadd.f32 %v1384_v52, %v1383_v15 }
 0x4d1   : > { %3065 = vtanh.f32 %v3750_v25 }
 0x4db   : > { %v3066_v57 = vpop.eup %3065 }
 0x4dc   : > { %v1387_v61 = vmul.f32 %v3066_v57, %v3064_v59  ;;  %v1569_v57 = vrot.slane %v3750_v25, 7 }
 0x4de   : > { %v1389_v63 = vrot.slane %v1387_v61, 3  ;;  %v3754_v62 = vsel %vm2144_vm2, %v3709_v58, %v1387_v61 }
 0x4e0   : > { %1456 = vmatmul.mubr.f32.vlgmr.msra.gmra.mrb[10].mxu0 %v1389_v63  ;;  %1527 = vmatmul.mubr.f32.vlgmr.msra.gmra.mrb[10].mxu1 %v1389_v63 }
 0x4e1   : > { %2751 = vmatpush1.bf16.msra.mxu0 %v3466_v17  ;;  %2783 = vmatpush1.bf16.msra.mxu1 %v3469_v18 }
 0x4e2   : > { %2753 = vmatprep.subr.bf16.mxu0 %v3471_v19  ;;  %2785 = vmatprep.subr.bf16.mxu1 %v3474_v23 }
 0x4e3   : > { %1643 = vmatprep.mubr.f32.mxu0 %v3262_v39  ;;  %1714 = vmatprep.mubr.f32.mxu1 %v3262_v39 }
 0x4e5   : > { %2755 = vmatpush1.bf16.msra.mxu0 %v3477_v29  ;;  %2787 = vmatpush1.bf16.msra.mxu1 %v3481_v30 }
 0x4e6   : > { %2757 = vmatprep.subr.bf16.mxu0 %v3483_v31  ;;  %2789 = vmatprep.subr.bf16.mxu1 %v3486_v35 }
 0x4e9   : > { %2759 = vmatpush1.bf16.msra.mxu0 %v3491_v42  ;;  %2791 = vmatpush1.bf16.msra.mxu1 %v3495_v43 }
 0x4ea   : > { %2761 = vmatprep.subr.bf16.mxu0 %v3497_v44  ;;  %2793 = vmatprep.subr.bf16.mxu1 %v3500_v48 }
 0x4ed   : > { %2763 = vmatpush1.bf16.msra.mxu0 %v3503_v54  ;;  %2795 = vmatpush1.bf16.msra.mxu1 %v3507_v55 }
 0x4ee   : > { %2765 = vmatprep.subr.bf16.mxu0 %v3509_v56  ;;  %2797 = vmatprep.subr.bf16.mxu1 %v3512_v60 }
 0x4f1   : > { %2767 = vmatpush1.bf16.msra.mxu0 %v3515_v2  ;;  %2799 = vmatpush1.bf16.msra.mxu1 %v3519_v3 }
 0x4f2   : > { %2769 = vmatprep.subr.bf16.mxu0 %v3521_v4  ;;  %2801 = vmatprep.subr.bf16.mxu1 %v3524_v9 }
 0x4f5   : > { %2771 = vmatpush1.bf16.msra.mxu0 %v3527_v16  ;;  %2803 = vmatpush1.bf16.msra.mxu1 %v3531_v20 }
 0x4f6   : > { %2773 = vmatprep.subr.bf16.mxu0 %v3533_v21  ;;  %2805 = vmatprep.subr.bf16.mxu1 %v3536_v26 }
 0x4f9   : > { %2775 = vmatpush1.bf16.msra.mxu0 %v3539_v36  ;;  %2807 = vmatpush1.bf16.msra.mxu1 %v3543_v37 }
 0x4fa   : > { %2777 = vmatprep.subr.bf16.mxu0 %v3545_v38  ;;  %2809 = vmatprep.subr.bf16.mxu1 %v3548_v45 }
 0x4fd   : > { %2779 = vmatpush1.bf16.msra.mxu0 %v3551_v49  ;;  %2811 = vmatpush1.bf16.msra.mxu1 %v3555_v50 }
 0x4fe   : > { %2813 = vmatprep.subr.bf16.mxu0 %v3460_v6  ;;  %2845 = vmatprep.subr.bf16.mxu1 %v3462_v10 }
 0x5b3   : > { %v1457_v34 = vpop.f32.mrb[10].mxu0  ;;  %v1528_v58 = vpop.f32.mrb[10].mxu1 }
 0x5b4   : > { %v1537_v0 = vrot.slane %v1457_v34, 4  ;;  %v1459_v1 = vpop.f32.mrb[11].mxu0  ;;  %v1530_v5 = vpop.f32.mrb[11].mxu1  ;;  %v1539_v33 = vrot.slane %v1528_v58, 4 }
 0x5b5   : > { %v1538_v11 = vrot.slane %v1459_v1, 4  ;;  %v1540_v27 = vrot.slane %v1530_v5, 4 }
 0x5b6   : > { %v1545_v13 = vadd.f32 %v1537_v0, %v3601_v7  ;;  %v1547_v41 = vadd.f32 %v1539_v33, %v3610_v40 }
 0x5b7   : > { %v1546_v14 = vadd.f32 %v1538_v11, %v3603_v8  ;;  %v1548_v53 = vadd.f32 %v1540_v27, %v3607_v32 }
 0x5b8   : > { %v2283_v22 = vmul.f32 -1.442695, %v1545_v13 }
 0x5b9   : > { %v2284_v24 = vmul.f32 -1.442695, %v1546_v14  ;;  %v2285_v28 = vmul.f32 -1.442695, %v1548_v53 }
 0x5ba   : > { %3067 = vpow2.f32 %v2283_v22 }
 0x5bb   : > { %3069 = vpow2.f32 %v2284_v24 }
 0x5bc   : > { %3071 = vpow2.f32 %v2285_v28 }
 0x5bd   : > { %3073 = vtanh.f32 %v1547_v41 }
 0x5c4   : > { %v3068_v46 = vpop.eup %3067 }
 0x5c5   : > { %v3070_v47 = vpop.eup %3069  ;;  %v1552_v51 = vadd.f32 1.0, %v3068_v46 }
 0x5c6   : > { %v1558_v52 = vadd.f32 1.0, %v3070_v47  ;;  %v3072_v12 = vpop.eup %3071 }
 0x5c7   : > { %3075 = vrcp.f32 %v1552_v51  ;;  %v3074_v15 = vpop.eup %3073  ;;  %v1565_v34 = vadd.f32 1.0, %v3072_v12 }
 0x5c8   : > { %3077 = vrcp.f32 %v1558_v52 }
 0x5c9   : > { %3079 = vrcp.f32 %v1565_v34 }
 0x5d1   : > { %v3076_v59 = vpop.eup %3075 }
 0x5d2   : > { %v3078_v61 = vpop.eup %3077  ;;  %v1572_v63 = vmul.f32 %v3076_v59, %v3074_v15 }
 0x5d3   : > { %v1571_v58 = vmul.f32 %v3078_v61, %v1569_v57  ;;  %v3080_v1 = vpop.eup %3079 }
 0x5d5   : > { %v3795_v0 = vadd.f32 %v1572_v63, %v1571_v58 }
 0x5d7   : > { %3081 = vtanh.f32 %v3795_v0  ;;  %v1757_v58 = vrot.slane %v3795_v0, 7 }
 0x5e1   : > { %v3082_v5 = vpop.eup %3081 }
 0x5e2   : > { %v1575_v11 = vmul.f32 %v3082_v5, %v3080_v1 }
 0x5e4   : > { %v1577_v13 = vrot.slane %v1575_v11, 4  ;;  %v3799_v14 = vsel %vm2146_vm3, %v3754_v62, %v1575_v11 }
 0x5e6   : > { %1644 = vmatmul.mubr.f32.vlgmr.msra.gmra.mrb[12].mxu0 %v1577_v13  ;;  %1715 = vmatmul.mubr.f32.vlgmr.msra.gmra.mrb[12].mxu1 %v1577_v13 }
 0x5e7   : > { %2815 = vmatpush1.bf16.msra.mxu0 %v3466_v17  ;;  %2847 = vmatpush1.bf16.msra.mxu1 %v3469_v18 }
 0x5e8   : > { %2817 = vmatprep.subr.bf16.mxu0 %v3471_v19  ;;  %2849 = vmatprep.subr.bf16.mxu1 %v3474_v23 }
 0x5e9   : > { %1831 = vmatprep.mubr.f32.mxu0 %v3262_v39  ;;  %1902 = vmatprep.mubr.f32.mxu1 %v3262_v39 }
 0x5eb   : > { %2819 = vmatpush1.bf16.msra.mxu0 %v3477_v29  ;;  %2851 = vmatpush1.bf16.msra.mxu1 %v3481_v30 }
 0x5ec   : > { %2821 = vmatprep.subr.bf16.mxu0 %v3483_v31  ;;  %2853 = vmatprep.subr.bf16.mxu1 %v3486_v35 }
 0x5ef   : > { %2823 = vmatpush1.bf16.msra.mxu0 %v3491_v42  ;;  %2855 = vmatpush1.bf16.msra.mxu1 %v3495_v43 }
 0x5f0   : > { %2825 = vmatprep.subr.bf16.mxu0 %v3497_v44  ;;  %2857 = vmatprep.subr.bf16.mxu1 %v3500_v48 }
 0x5f3   : > { %2827 = vmatpush1.bf16.msra.mxu0 %v3503_v54  ;;  %2859 = vmatpush1.bf16.msra.mxu1 %v3507_v55 }
 0x5f4   : > { %2829 = vmatprep.subr.bf16.mxu0 %v3509_v56  ;;  %2861 = vmatprep.subr.bf16.mxu1 %v3512_v60 }
 0x5f7   : > { %2831 = vmatpush1.bf16.msra.mxu0 %v3515_v2  ;;  %2863 = vmatpush1.bf16.msra.mxu1 %v3519_v3 }
 0x5f8   : > { %2833 = vmatprep.subr.bf16.mxu0 %v3521_v4  ;;  %2865 = vmatprep.subr.bf16.mxu1 %v3524_v9 }
 0x5fb   : > { %2835 = vmatpush1.bf16.msra.mxu0 %v3527_v16  ;;  %2867 = vmatpush1.bf16.msra.mxu1 %v3531_v20 }
 0x5fc   : > { %2837 = vmatprep.subr.bf16.mxu0 %v3533_v21  ;;  %2869 = vmatprep.subr.bf16.mxu1 %v3536_v26 }
 0x5ff   : > { %2839 = vmatpush1.bf16.msra.mxu0 %v3539_v36  ;;  %2871 = vmatpush1.bf16.msra.mxu1 %v3543_v37 }
 0x600   : > { %2841 = vmatprep.subr.bf16.mxu0 %v3545_v38  ;;  %2873 = vmatprep.subr.bf16.mxu1 %v3548_v45 }
 0x603   : > { %2843 = vmatpush1.bf16.msra.mxu0 %v3551_v49  ;;  %2875 = vmatpush1.bf16.msra.mxu1 %v3555_v50 }
 0x604   : > { %2877 = vmatprep.subr.bf16.mxu0 %v3460_v6  ;;  %2909 = vmatprep.subr.bf16.mxu1 %v3462_v10 }
 0x6b9   : > { %v1645_v25 = vpop.f32.mrb[12].mxu0  ;;  %v1716_v62 = vpop.f32.mrb[12].mxu1 }
 0x6ba   : > { %v1725_v22 = vrot.slane %v1645_v25, 3  ;;  %v1647_v24 = vpop.f32.mrb[13].mxu0  ;;  %v1718_v27 = vpop.f32.mrb[13].mxu1  ;;  %v1727_v6 = vrot.slane %v1716_v62, 3 }
 0x6bb   : > { %v1726_v53 = vrot.slane %v1647_v24, 3  ;;  %v1728_v47 = vrot.slane %v1718_v27, 3 }
 0x6bc   : > { %v1733_v33 = vadd.f32 %v1725_v22, %v3601_v7  ;;  %v1735_v10 = vadd.f32 %v1727_v6, %v3610_v40 }
 0x6bd   : > { %v1734_v28 = vadd.f32 %v1726_v53, %v3603_v8  ;;  %v1736_v51 = vadd.f32 %v1728_v47, %v3607_v32 }
 0x6be   : > { %v2286_v41 = vmul.f32 -1.442695, %v1733_v33 }
 0x6bf   : > { %v2287_v46 = vmul.f32 -1.442695, %v1734_v28  ;;  %v2288_v52 = vmul.f32 -1.442695, %v1736_v51 }
 0x6c0   : > { %3083 = vpow2.f32 %v2286_v41 }
 0x6c1   : > { %3085 = vpow2.f32 %v2287_v46 }
 0x6c2   : > { %3087 = vpow2.f32 %v2288_v52 }
 0x6c3   : > { %3089 = vtanh.f32 %v1735_v10 }
 0x6ca   : > { %v3084_v12 = vpop.eup %3083 }
 0x6cb   : > { %v3086_v15 = vpop.eup %3085  ;;  %v1740_v59 = vadd.f32 1.0, %v3084_v12 }
 0x6cc   : > { %v1746_v57 = vadd.f32 1.0, %v3086_v15  ;;  %v3088_v61 = vpop.eup %3087 }
 0x6cd   : > { %3091 = vrcp.f32 %v1740_v59  ;;  %v3090_v63 = vpop.eup %3089  ;;  %v1753_v11 = vadd.f32 1.0, %v3088_v61 }
 0x6ce   : > { %3093 = vrcp.f32 %v1746_v57 }
 0x6cf   : > { %3095 = vrcp.f32 %v1753_v11 }
 0x6d7   : > { %v3092_v34 = vpop.eup %3091 }
 0x6d8   : > { %v3094_v1 = vpop.eup %3093  ;;  %v1760_v5 = vmul.f32 %v3092_v34, %v3090_v63 }
 0x6d9   : > { %v1759_v13 = vmul.f32 %v3094_v1, %v1757_v58  ;;  %v3096_v62 = vpop.eup %3095 }
 0x6db   : > { %v3840_v25 = vadd.f32 %v1760_v5, %v1759_v13 }
 0x6dd   : > { %3097 = vtanh.f32 %v3840_v25 }
 0x6e7   : > { %v3098_v22 = vpop.eup %3097 }
 0x6e8   : > { %v1763_v24 = vmul.f32 %v3098_v22, %v3096_v62 }
 0x6ea   : > { %v1765_v27 = vrot.slane %v1763_v24, 5  ;;  %v3844_v53 = vsel %vm2148_vm4, %v3799_v14, %v1763_v24 }
 0x6ec   : > { %1832 = vmatmul.mubr.f32.vlgmr.msra.gmra.mrb[14].mxu0 %v1765_v27  ;;  %1903 = vmatmul.mubr.f32.vlgmr.msra.gmra.mrb[14].mxu1 %v1765_v27 }
 0x6ed   : > { %2879 = vmatpush1.bf16.msra.mxu0 %v3466_v17  ;;  %2911 = vmatpush1.bf16.msra.mxu1 %v3469_v18 }
 0x6ee   : > { %2881 = vmatprep.subr.bf16.mxu0 %v3471_v19  ;;  %2913 = vmatprep.subr.bf16.mxu1 %v3474_v23 }
 0x6ef   : > { %2019 = vmatprep.mubr.f32.mxu0 %v3262_v39  ;;  %2090 = vmatprep.mubr.f32.mxu1 %v3262_v39 }
 0x6f1   : > { %2883 = vmatpush1.bf16.msra.mxu0 %v3477_v29  ;;  %2915 = vmatpush1.bf16.msra.mxu1 %v3481_v30 }
 0x6f2   : > { %2885 = vmatprep.subr.bf16.mxu0 %v3483_v31  ;;  %2917 = vmatprep.subr.bf16.mxu1 %v3486_v35 }
 0x6f5   : > { %2887 = vmatpush1.bf16.msra.mxu0 %v3491_v42  ;;  %2919 = vmatpush1.bf16.msra.mxu1 %v3495_v43 }
 0x6f6   : > { %2889 = vmatprep.subr.bf16.mxu0 %v3497_v44  ;;  %2921 = vmatprep.subr.bf16.mxu1 %v3500_v48 }
 0x6f9   : > { %2891 = vmatpush1.bf16.msra.mxu0 %v3503_v54  ;;  %2923 = vmatpush1.bf16.msra.mxu1 %v3507_v55 }
 0x6fa   : > { %2893 = vmatprep.subr.bf16.mxu0 %v3509_v56  ;;  %2925 = vmatprep.subr.bf16.mxu1 %v3512_v60 }
 0x6fd   : > { %2895 = vmatpush1.bf16.msra.mxu0 %v3515_v2  ;;  %2927 = vmatpush1.bf16.msra.mxu1 %v3519_v3 }
 0x6fe   : > { %2897 = vmatprep.subr.bf16.mxu0 %v3521_v4  ;;  %2929 = vmatprep.subr.bf16.mxu1 %v3524_v9 }
 0x701   : > { %2899 = vmatpush1.bf16.msra.mxu0 %v3527_v16  ;;  %2931 = vmatpush1.bf16.msra.mxu1 %v3531_v20  ;;  %v1945_v20 = vrot.slane %v3840_v25, 7 }
 0x702   : > { %2901 = vmatprep.subr.bf16.mxu0 %v3533_v21  ;;  %2933 = vmatprep.subr.bf16.mxu1 %v3536_v26 }
 0x705   : > { %2903 = vmatpush1.bf16.msra.mxu0 %v3539_v36  ;;  %2935 = vmatpush1.bf16.msra.mxu1 %v3543_v37 }
 0x706   : > { %2905 = vmatprep.subr.bf16.mxu0 %v3545_v38  ;;  %2937 = vmatprep.subr.bf16.mxu1 %v3548_v45 }
 0x709   : > { %2907 = vmatpush1.bf16.msra.mxu0 %v3551_v49  ;;  %2939 = vmatpush1.bf16.msra.mxu1 %v3555_v50 }
 0x7bf   : > { %v1833_v17 = vpop.f32.mrb[14].mxu0  ;;  %v1904_v18 = vpop.f32.mrb[14].mxu1 }
 0x7c0   : > { %v1913_v19 = vrot.slane %v1833_v17, 2  ;;  %v1835_v23 = vpop.f32.mrb[15].mxu0  ;;  %v1906_v29 = vpop.f32.mrb[15].mxu1  ;;  %v1915_v48 = vrot.slane %v1904_v18, 2  ;;  %v2295_v17 = vld [vmem:[%s3913_s4] ss:$0 sm:$0xff] }
 0x7c1   : > { %v1914_v30 = vrot.slane %v1835_v23, 2  ;;  %v1916_v43 = vrot.slane %v1906_v29, 2  ;;  %v2296_v23 = vld [vmem:[#allocation2] ss:$0 sm:$0xff] }
 0x7c2   : > { %v1921_v31 = vadd.f32 %v1913_v19, %v3601_v7  ;;  %v1923_v55 = vadd.f32 %v1915_v48, %v3610_v40 }
 0x7c3   : > { %v1922_v35 = vadd.f32 %v1914_v30, %v3603_v8  ;;  %v1924_v44 = vadd.f32 %v1916_v43, %v3607_v32 }
 0x7c4   : > { %v2289_v39 = vmul.f32 -1.442695, %v1921_v31 }
 0x7c5   : > { %v2290_v42 = vmul.f32 -1.442695, %v1922_v35  ;;  %v2291_v54 = vmul.f32 -1.442695, %v1924_v44 }
 0x7c6   : > { %3099 = vpow2.f32 %v2289_v39 }
 0x7c7   : > { %3101 = vpow2.f32 %v2290_v42 }
 0x7c8   : > { %3103 = vpow2.f32 %v2291_v54 }
 0x7c9   : > { %3105 = vtanh.f32 %v1923_v55 }
 0x7d0   : > { %v3100_v56 = vpop.eup %3099 }
 0x7d1   : > { %v3102_v60 = vpop.eup %3101  ;;  %v1928_v2 = vadd.f32 1.0, %v3100_v56 }
 0x7d2   : > { %v1934_v3 = vadd.f32 1.0, %v3102_v60  ;;  %v3104_v4 = vpop.eup %3103 }
 0x7d3   : > { %3107 = vrcp.f32 %v1928_v2  ;;  %v3106_v9 = vpop.eup %3105  ;;  %v1941_v36 = vadd.f32 1.0, %v3104_v4 }
 0x7d4   : > { %3109 = vrcp.f32 %v1934_v3 }
 0x7d5   : > { %3111 = vrcp.f32 %v1941_v36 }
 0x7dd   : > { %v3108_v16 = vpop.eup %3107 }
 0x7de   : > { %v3110_v21 = vpop.eup %3109  ;;  %v1948_v26 = vmul.f32 %v3108_v16, %v3106_v9 }
 0x7df   : > { %v1947_v37 = vmul.f32 %v3110_v21, %v1945_v20  ;;  %v3112_v45 = vpop.eup %3111 }
 0x7e1   : > { %v1949_v38 = vadd.f32 %v1948_v26, %v1947_v37 }
 0x7e3   : > { %3113 = vtanh.f32 %v1949_v38  ;;  %v2133_v13 = vrot.slane %v1949_v38, 7 }
 0x7ed   : > { %v3114_v49 = vpop.eup %3113 }
 0x7ee   : > { %v1951_v50 = vmul.f32 %v3114_v49, %v3112_v45 }
 0x7f0   : > { %v1953_v0 = vrot.slane %v1951_v50, 6  ;;  %v2151_v14 = vsel %vm2150_vm5, %v3844_v53, %v1951_v50 }
 0x7f2   : > { %2020 = vmatmul.mubr.f32.vlgmr.msra.gmra.mrb[16].mxu0 %v1953_v0  ;;  %2091 = vmatmul.mubr.f32.vlgmr.msra.gmra.mrb[16].mxu1 %v1953_v0 }
 0x8c5   : > { %v2021_v33 = vpop.f32.mrb[16].mxu0  ;;  %v2092_v28 = vpop.f32.mrb[16].mxu1 }
 0x8c6   : > { %v2101_v41 = vrot.slane %v2021_v33, 1  ;;  %v2023_v46 = vpop.f32.mrb[17].mxu0  ;;  %v2094_v47 = vpop.f32.mrb[17].mxu1  ;;  %v2103_v57 = vrot.slane %v2092_v28, 1 }
 0x8c7   : > { %v2102_v51 = vrot.slane %v2023_v46, 1  ;;  %v2104_v15 = vrot.slane %v2094_v47, 1 }
 0x8c8   : > { %v2109_v6 = vadd.f32 %v2101_v41, %v3601_v7  ;;  %v2111_v63 = vadd.f32 %v2103_v57, %v3610_v40 }
 0x8c9   : > { %v2110_v52 = vadd.f32 %v2102_v51, %v3603_v8  ;;  %v2112_v59 = vadd.f32 %v2104_v15, %v3607_v32 }
 0x8ca   : > { %v2292_v10 = vmul.f32 -1.442695, %v2109_v6 }
 0x8cb   : > { %v2293_v12 = vmul.f32 -1.442695, %v2110_v52  ;;  %v2294_v61 = vmul.f32 -1.442695, %v2112_v59 }
 0x8cc   : > { %3115 = vpow2.f32 %v2292_v10 }
 0x8cd   : > { %3117 = vpow2.f32 %v2293_v12 }
 0x8ce   : > { %3119 = vpow2.f32 %v2294_v61 }
 0x8cf   : > { %3121 = vtanh.f32 %v2111_v63 }
 0x8d6   : > { %v3116_v34 = vpop.eup %3115 }
 0x8d7   : > { %v3118_v58 = vpop.eup %3117  ;;  %v2116_v1 = vadd.f32 1.0, %v3116_v34 }
 0x8d8   : > { %v2122_v5 = vadd.f32 1.0, %v3118_v58  ;;  %v3120_v7 = vpop.eup %3119 }
 0x8d9   : > { %3123 = vrcp.f32 %v2116_v1  ;;  %v3122_v8 = vpop.eup %3121  ;;  %v2129_v62 = vadd.f32 1.0, %v3120_v7 }
 0x8da   : > { %3125 = vrcp.f32 %v2122_v5 }
 0x8db   : > { %3127 = vrcp.f32 %v2129_v62 }
 0x8e3   : > { %v3124_v11 = vpop.eup %3123 }
 0x8e4   : > { %v3126_v25 = vpop.eup %3125  ;;  %v2136_v32 = vmul.f32 %v3124_v11, %v3122_v8 }
 0x8e5   : > { %v2135_v22 = vmul.f32 %v3126_v25, %v2133_v13  ;;  %v3128_v40 = vpop.eup %3127 }
 0x8e7   : > { %v2137_v24 = vadd.f32 %v2136_v32, %v2135_v22 }
 0x8e9   : > { %3129 = vtanh.f32 %v2137_v24 }
 0x8f3   : > { %v3130_v27 = vpop.eup %3129 }
 0x8f4   : > { %v2139_v53 = vmul.f32 %v3130_v27, %v3128_v40 }
 0x8f6   : > { %v2153_v18 = vsel %vm2152_vm6, %v2151_v14, %v2139_v53 }
 0x8f7   : > { %v2161_v19 = vmul.f32 %v2295_v17, %v2153_v18 }
 0x8f9   : > { %2162 = vadd.xlane.f32.xlu0 %v2161_v19 }
 0x986   : > { %v2163_v29 = vpop.xlane.xlu0 %2162 }
 0x987   : > { %v2171_v30 = vadd.f32 %v2296_v23, %v2163_v29 }
 0x989   : > { %2173 = vst.msk [vmem:[%s298_s11] sm:$0xff] %vm2172_vm7, %v2171_v30 }
 0x98a PF: > { %p19_p9 = scmp.ge.s32.totalorder %s3394_s15, 4   ;;  %s3927_s23 = smov %s3247_s24 }
 0x98b   : > { %s3928_s24 = smov %s3251_s25  ;;  %s3929_s25 = smov %s3405_s20 }
 0x98c   : > { %s3930_s26 = smov %s3394_s15  ;;  %21 = sbr.rel (!%p19_p9) target bundleno = 7 (0x7), region = 92 }
 0x993   :  { %2193 = vsyncpa [#allocation4], 1 }
 0x994   :  { %2195 = vsyncpa [#allocation4 + $0x1], 1 }
 0x995   :  { %2196 = vsyncpa [#allocation6], 1 }

</bundles_post_ra>
